<compile_context>
chip_gen: v6e
topology: v6e:2x2x1
jax: 0.10.0
libtpu: 0.0.40
codegen_flags: <defaults>
</compile_context>

<pallas_src>
import functools

import jax
import jax.numpy as jnp
from jax.experimental import pallas as pl
from jax.experimental.pallas import tpu as pltpu


def bottleneck_kernel(x_ref, mask_ref, w1_ref, w2_ref, wm_ref,
                      b1_ref, b2_ref, b3x2_ref, o_ref, *, stride):
    TR, Wp, Cin = x_ref.shape            # x is pre-padded: Wp = W + 2
    W = Wp - 2
    P = w1_ref.shape[1]
    W_out = o_ref.shape[1]
    C_out = o_ref.shape[2]
    cdt = w1_ref.dtype                   # MXU operand dtype (bf16 or f32)

    x = x_ref[...]                                            # (TR, Wp, Cin)

    # --- conv1 (1x1, over padded width) + bn1 bias + relu -------------------
    h = jnp.dot(x.reshape(TR * Wp, Cin), w1_ref[...],
                preferred_element_type=jnp.float32)           # (TR*Wp, P) f32
    h = jnp.maximum(h + b1_ref[...], 0.0).reshape(TR, Wp, P)
    # zero the two pad columns with one broadcast mask multiply
    h = (h * mask_ref[...]).astype(cdt)

    span = stride * (W_out - 1) + 1

    def taps(t):
        # three shifted views of the 1x3 window over the padded width
        if stride == 1:
            return [t[:, k:k + W_out, :] for k in range(3)]
        return [t[:, k:k + span:stride, :] for k in range(3)]

    # --- conv2 (1x3, stride, pad 1) as one K=3P matmul + bn2 bias + relu ----
    im2 = jnp.concatenate(taps(h), axis=-1)                   # (TR, W_out, 3P)
    h2 = jnp.dot(im2.reshape(TR * W_out, 3 * P), w2_ref[...],
                 preferred_element_type=jnp.float32)
    h2 = jnp.maximum(h2 + b2_ref[...], 0.0).astype(cdt)       # (TR*W_out, P)

    # --- conv3 (1x1) and downsample (1x3 strided on x) merged into ONE
    #     matmul:  [h2 | im2col(x)] @ [w3 ; wd],  K = P + 3*Cin, N = C_out,
    #     followed by a single 2*b3 bias (bn3 bias hits both branches) -------
    imd = jnp.concatenate(taps(x), axis=-1)                   # (TR, W_out, 3Cin)
    imc = jnp.concatenate([h2, imd.reshape(TR * W_out, 3 * Cin)], axis=-1)
    y = jnp.dot(imc, wm_ref[...],
                preferred_element_type=jnp.float32) + b3x2_ref[...]

    # --- residual add (already inside y) + relu ------------------------------
    out = jnp.maximum(y, 0.0)
    o_ref[...] = out.reshape(TR, W_out, C_out).astype(o_ref.dtype)


def _fold_bn(bn, eps=1e-5):
    gamma, beta, mean, var = bn
    a = (gamma / jnp.sqrt(var + eps)).astype(jnp.float32)
    b = (beta - mean * a).astype(jnp.float32)
    return a, b


def _vmem_budget():
    """Physical VMEM and a safe scoped limit for the current TPU generation."""
    try:
        cap = int(pltpu.get_tpu_info().vmem_capacity_bytes)
    except Exception:
        cap = 64 * 1024 * 1024            # conservative (v7x: 64 MiB per core)
    limit = min((cap * 3) // 4, 100 * 1024 * 1024)   # ~48 MiB v7x, ~96 MiB v5e/v6e
    return cap, int(limit)


def _pick_tile_rows(R, W, W_out, Cin, P, C_out, op_bytes, out_bytes,
                    limit_bytes, max_rows=256, min_steps=4):
    """Largest divisor of R whose working set fits VMEM after subtracting the
    resident (double-buffered) weights, while keeping >= min_steps grid steps
    (preferably an even count, so both v7x TensorCores stay busy)."""
    Wp = W + 2
    K = P + 3 * Cin
    # Row-count-independent residents: weights / biases / mask, x2 buffers.
    fixed = (2 * (Cin * P + 3 * P * P + K * C_out) * op_bytes
             + 2 * (2 * P + C_out) * 4
             + 2 * Wp * P * 4)
    # Per-row working set.
    per_row = (2 * Wp * Cin * op_bytes            # x block (double-buffered)
               + 2 * W_out * C_out * out_bytes    # out block (double-buffered)
               + Wp * P * (4 + op_bytes)          # h (f32) + masked cdt copy
               + W_out * 3 * P * op_bytes         # conv2 im2col
               + W_out * P * (4 + op_bytes)       # h2 (f32) + cdt copy
               + W_out * 3 * Cin * op_bytes       # downsample taps of x
               + W_out * K * op_bytes             # merged [h2 | imd] im2col
               + 2 * W_out * C_out * 4)           # merged matmul out + relu
    budget = max(limit_bytes - fixed, per_row) * 2 // 3   # Mosaic scratch headroom
    min_steps = min(min_steps, R)
    best, best_even = 1, 0
    for t in range(1, min(R, max_rows) + 1):
        if R % t:
            continue
        steps = R // t
        if steps < min_steps:
            break                                  # steps only shrink further
        if t * per_row <= budget:
            best = t
            if steps % 2 == 0:
                best_even = t
    return best_even if best_even else best


def bottleneck_pallas(x_nchw, w1_t, w2_t, w3_t, wd_t, bn1, bn2, bn3,
                      stride=1, compute_dtype=jnp.bfloat16, out_dtype=None,
                      tile_rows=None):
    """x_nchw: (N, Cin, H, W) float32; conv weights in PyTorch OIHW layout."""
    N, Cin, H, W = x_nchw.shape
    P = w1_t.shape[0]
    C_out = 4 * P
    W_out = (W - 1) // stride + 1
    R = N * H
    Wp = W + 2
    out_dtype = jnp.float32 if out_dtype is None else out_dtype

    a1, b1 = _fold_bn(bn1)
    a2, b2 = _fold_bn(bn2)
    a3, b3 = _fold_bn(bn3)

    # Fold BN scales into the conv weights (output-channel scaling); only the
    # bias adds are left in-kernel.  The 1x3 taps are stacked along K so the
    # kernel runs single deep-K matmuls, and conv3 / downsample weights are
    # packed into ONE (P + 3*Cin, C_out) matrix for the merged final matmul.
    w1 = jnp.transpose(w1_t[:, :, 0, 0], (1, 0)) * a1[None, :]              # (Cin, P)
    w2 = (jnp.transpose(w2_t[:, :, 0, :], (2, 1, 0))
          * a2[None, None, :]).reshape(3 * P, P)                            # (3P, P)
    w3 = jnp.transpose(w3_t[:, :, 0, 0], (1, 0)) * a3[None, :]              # (P, 4P)
    wd = (jnp.transpose(wd_t[:, :, 0, :], (2, 1, 0))
          * a3[None, None, :]).reshape(3 * Cin, C_out)                      # (3Cin, 4P)
    wm = jnp.concatenate([w3, wd], axis=0).astype(compute_dtype)            # (P+3Cin, 4P)

    w1 = w1.astype(compute_dtype)
    w2 = w2.astype(compute_dtype)
    b1 = b1[None, :]
    b2 = b2[None, :]
    b3x2 = (2.0 * b3)[None, :]     # bn3 bias is added to BOTH branches

    # 0/1 mask zeroing conv1's two pad columns (replaces iota + compares).
    mask = jnp.zeros((1, Wp, P), jnp.float32).at[:, 1:W + 1, :].set(1.0)

    # NCHW -> rows-of-NHWC, cast to the MXU operand dtype FIRST (halves the
    # transpose/pad HBM traffic), zero-padded once along W.
    x_rows = jnp.transpose(x_nchw.astype(compute_dtype),
                           (0, 2, 3, 1)).reshape(R, W, Cin)
    x_rows = jnp.pad(x_rows, ((0, 0), (1, 1), (0, 0)))

    op_bytes = jnp.dtype(compute_dtype).itemsize
    out_bytes = jnp.dtype(out_dtype).itemsize
    _, vmem_limit = _vmem_budget()
    if tile_rows is None:
        tile_rows = _pick_tile_rows(R, W, W_out, Cin, P, C_out,
                                    op_bytes, out_bytes, vmem_limit)
    assert R % tile_rows == 0, (R, tile_rows)

    out_flat = pl.pallas_call(
        functools.partial(bottleneck_kernel, stride=stride),
        out_shape=jax.ShapeDtypeStruct((R, W_out, C_out), out_dtype),
        grid_spec=pltpu.PrefetchScalarGridSpec(
            num_scalar_prefetch=0,
            grid=(R // tile_rows,),
            in_specs=[
                pl.BlockSpec((tile_rows, Wp, Cin), lambda i: (i, 0, 0)),
                pl.BlockSpec((1, Wp, P), lambda i: (0, 0, 0)),
                pl.BlockSpec((Cin, P), lambda i: (0, 0)),
                pl.BlockSpec((3 * P, P), lambda i: (0, 0)),
                pl.BlockSpec((P + 3 * Cin, C_out), lambda i: (0, 0)),
                pl.BlockSpec((1, P), lambda i: (0, 0)),
                pl.BlockSpec((1, P), lambda i: (0, 0)),
                pl.BlockSpec((1, C_out), lambda i: (0, 0)),
            ],
            out_specs=pl.BlockSpec((tile_rows, W_out, C_out),
                                   lambda i: (i, 0, 0)),
        ),
        compiler_params=pltpu.CompilerParams(
            dimension_semantics=("parallel",),
            vmem_limit_bytes=vmem_limit),
    )(x_rows, mask, w1, w2, wm, b1, b2, b3x2)

    # rows-of-NHWC -> NCHW
    out = out_flat.reshape(N, H, W_out, C_out)
    return jnp.transpose(out, (0, 3, 1, 2))


def bottleneck_ref(x, w1, w2, w3, wd, bn1, bn2, bn3, stride):
    """Pure-JAX reference matching the PyTorch forward (inference-mode BN)."""
    eps = 1e-5

    def conv(v, w, s=1, p=0):
        return jax.lax.conv_general_dilated(
            v, w, window_strides=(1, s), padding=[(0, 0), (p, p)],
            dimension_numbers=("NCHW", "OIHW", "NCHW"))

    def bn(v, prm):
        g, b, m, var = prm
        g = g[None, :, None, None]
        b = b[None, :, None, None]
        m = m[None, :, None, None]
        var = var[None, :, None, None]
        return (v - m) / jnp.sqrt(var + eps) * g + b

    out = jax.nn.relu(bn(conv(x, w1), bn1))
    out = jax.nn.relu(bn(conv(out, w2, stride, 1), bn2))
    out = bn(conv(out, w3), bn3)
    ident = bn(conv(x, wd, stride, 1), bn3)   # bn3 reused, as in the module
    return jax.nn.relu(out + ident)


if __name__ == "__main__":
    key = jax.random.PRNGKey(0)
    N, Cin, H, W = 2, 4, 16, 16
    planes, stride = 4, 1
    P, C_out = planes, planes * 4

    ks = jax.random.split(key, 8)
    x = jax.random.normal(ks[0], (N, Cin, H, W), jnp.float32)
    w1_t = 0.1 * jax.random.normal(ks[1], (P, Cin, 1, 1), jnp.float32)
    w2_t = 0.1 * jax.random.normal(ks[2], (P, P, 1, 3), jnp.float32)
    w3_t = 0.1 * jax.random.normal(ks[3], (C_out, P, 1, 1), jnp.float32)
    wd_t = 0.1 * jax.random.normal(ks[4], (C_out, Cin, 1, 3), jnp.float32)

    def bn_params(k, c):
        k1, k2, k3, k4 = jax.random.split(k, 4)
        gamma = 1.0 + 0.1 * jax.random.normal(k1, (c,), jnp.float32)
        beta = 0.1 * jax.random.normal(k2, (c,), jnp.float32)
        mean = 0.1 * jax.random.normal(k3, (c,), jnp.float32)
        var = jax.random.uniform(k4, (c,), jnp.float32, 0.5, 1.5)
        return gamma, beta, mean, var

    bn1 = bn_params(ks[5], P)
    bn2 = bn_params(ks[6], P)
    bn3 = bn_params(ks[7], C_out)

    ref = bottleneck_ref(x, w1_t, w2_t, w3_t, wd_t, bn1, bn2, bn3, stride)

    # f32 MXU operands + f32 output: tight numerical check vs the reference.
    out_f32 = bottleneck_pallas(x, w1_t, w2_t, w3_t, wd_t, bn1, bn2, bn3,
                                stride=stride, compute_dtype=jnp.float32)
    out_f32 = jax.block_until_ready(out_f32)
    assert out_f32.shape == ref.shape == (N, C_out, H, (W - 1) // stride + 1)
    err32 = float(jnp.max(jnp.abs(out_f32 - ref)))
    assert jnp.allclose(out_f32, ref, atol=1e-4, rtol=1e-4), \
        f"f32 max abs err {err32}"

    # bf16 MXU operands + bf16 output (default perf config): loose tolerance.
    out_bf16 = bottleneck_pallas(x, w1_t, w2_t, w3_t, wd_t, bn1, bn2, bn3,
                                 stride=stride, compute_dtype=jnp.bfloat16,
                                 out_dtype=jnp.bfloat16)
    out_bf16 = jax.block_until_ready(out_bf16)
    errbf = float(jnp.max(jnp.abs(out_bf16.astype(jnp.float32) - ref)))
    assert jnp.allclose(out_bf16.astype(jnp.float32), ref,
                        atol=5e-2, rtol=5e-2), f"bf16 max abs err {errbf}"

    print("KERNEL_OK")
</pallas_src>

<mosaic_0001>
module attributes {stable_mosaic.version = 11 : i64} {
  func.func @bottleneck_kernel(%arg0: i32, %arg1: memref<8x18x4xf32, #tpu.memory_space<vmem>>, %arg2: memref<1x18x4xf32, #tpu.memory_space<vmem>>, %arg3: memref<4x4xf32, #tpu.memory_space<vmem>>, %arg4: memref<12x4xf32, #tpu.memory_space<vmem>>, %arg5: memref<16x16xf32, #tpu.memory_space<vmem>>, %arg6: memref<1x4xf32, #tpu.memory_space<vmem>>, %arg7: memref<1x4xf32, #tpu.memory_space<vmem>>, %arg8: memref<1x16xf32, #tpu.memory_space<vmem>>, %arg9: memref<8x16x16xf32, #tpu.memory_space<vmem>>) attributes {dimension_semantics = [#tpu.dimension_semantics<parallel>], iteration_bounds = array<i64: 4>, scalar_prefetch = 0 : i64, scratch_operands = 0 : i64, tpu.core_type = #tpu.core_type<tc>, window_params = [{transform_indices = @transform_0, window_bounds = array<i64: 8, 18, 4>}, {pipeline_mode = #tpu.pipeline_mode<synchronous>, transform_indices = @transform_1, window_bounds = array<i64: 1, 18, 4>}, {pipeline_mode = #tpu.pipeline_mode<synchronous>, transform_indices = @transform_2, window_bounds = array<i64: 4, 4>}, {pipeline_mode = #tpu.pipeline_mode<synchronous>, transform_indices = @transform_3, window_bounds = array<i64: 12, 4>}, {pipeline_mode = #tpu.pipeline_mode<synchronous>, transform_indices = @transform_4, window_bounds = array<i64: 16, 16>}, {pipeline_mode = #tpu.pipeline_mode<synchronous>, transform_indices = @transform_5, window_bounds = array<i64: 1, 4>}, {pipeline_mode = #tpu.pipeline_mode<synchronous>, transform_indices = @transform_6, window_bounds = array<i64: 1, 4>}, {pipeline_mode = #tpu.pipeline_mode<synchronous>, transform_indices = @transform_7, window_bounds = array<i64: 1, 16>}, {transform_indices = @transform_8, window_bounds = array<i64: 8, 16, 16>}]} {
    %c0 = arith.constant 0 : index
    %c0_0 = arith.constant 0 : index
    %c0_1 = arith.constant 0 : index
    %0 = vector.load %arg1[%c0, %c0_0, %c0_1] : memref<8x18x4xf32, #tpu.memory_space<vmem>>, vector<8x18x4xf32>
    %1 = vector.shape_cast %0 : vector<8x18x4xf32> to vector<144x4xf32>
    %c0_2 = arith.constant 0 : index
    %c0_3 = arith.constant 0 : index
    %2 = vector.load %arg3[%c0_2, %c0_3] : memref<4x4xf32, #tpu.memory_space<vmem>>, vector<4x4xf32>
    %cst = arith.constant dense<0.000000e+00> : vector<144x4xf32>
    %3 = tpu.matmul %1, %2, %cst {dimension_numbers = #tpu.dot_dimension_numbers<[1], [0], [0], [1], [0, 0, 1, 1], [], []>} : vector<144x4xf32>, vector<4x4xf32>, vector<144x4xf32> -> vector<144x4xf32>
    %c0_4 = arith.constant 0 : index
    %c0_5 = arith.constant 0 : index
    %4 = vector.load %arg6[%c0_4, %c0_5] : memref<1x4xf32, #tpu.memory_space<vmem>>, vector<1x4xf32>
    %5 = vector.broadcast %4 : vector<1x4xf32> to vector<144x4xf32>
    %6 = arith.addf %3, %5 : vector<144x4xf32>
    %cst_6 = arith.constant 0.000000e+00 : f32
    %7 = vector.broadcast %cst_6 : f32 to vector<144x4xf32>
    %8 = arith.maximumf %6, %7 : vector<144x4xf32>
    %9 = vector.shape_cast %8 : vector<144x4xf32> to vector<8x18x4xf32>
    %c0_7 = arith.constant 0 : index
    %c0_8 = arith.constant 0 : index
    %c0_9 = arith.constant 0 : index
    %10 = vector.load %arg2[%c0_7, %c0_8, %c0_9] : memref<1x18x4xf32, #tpu.memory_space<vmem>>, vector<1x18x4xf32>
    %11 = vector.broadcast %10 : vector<1x18x4xf32> to vector<8x18x4xf32>
    %12 = arith.mulf %9, %11 : vector<8x18x4xf32>
    %13 = vector.extract_strided_slice %12 {offsets = [0, 0, 0], sizes = [8, 16, 4], strides = [1, 1, 1]} : vector<8x18x4xf32> to vector<8x16x4xf32>
    %14 = vector.extract_strided_slice %12 {offsets = [0, 1, 0], sizes = [8, 16, 4], strides = [1, 1, 1]} : vector<8x18x4xf32> to vector<8x16x4xf32>
    %15 = vector.extract_strided_slice %12 {offsets = [0, 2, 0], sizes = [8, 16, 4], strides = [1, 1, 1]} : vector<8x18x4xf32> to vector<8x16x4xf32>
    %16 = tpu.concatenate %13, %14, %15 in 2 : vector<8x16x4xf32>, vector<8x16x4xf32>, vector<8x16x4xf32> -> vector<8x16x12xf32>
    %17 = vector.shape_cast %16 : vector<8x16x12xf32> to vector<128x12xf32>
    %c0_10 = arith.constant 0 : index
    %c0_11 = arith.constant 0 : index
    %18 = vector.load %arg4[%c0_10, %c0_11] : memref<12x4xf32, #tpu.memory_space<vmem>>, vector<12x4xf32>
    %cst_12 = arith.constant dense<0.000000e+00> : vector<128x4xf32>
    %19 = tpu.matmul %17, %18, %cst_12 {dimension_numbers = #tpu.dot_dimension_numbers<[1], [0], [0], [1], [0, 0, 1, 1], [], []>} : vector<128x12xf32>, vector<12x4xf32>, vector<128x4xf32> -> vector<128x4xf32>
    %c0_13 = arith.constant 0 : index
    %c0_14 = arith.constant 0 : index
    %20 = vector.load %arg7[%c0_13, %c0_14] : memref<1x4xf32, #tpu.memory_space<vmem>>, vector<1x4xf32>
    %21 = vector.broadcast %20 : vector<1x4xf32> to vector<128x4xf32>
    %22 = arith.addf %19, %21 : vector<128x4xf32>
    %cst_15 = arith.constant 0.000000e+00 : f32
    %23 = vector.broadcast %cst_15 : f32 to vector<128x4xf32>
    %24 = arith.maximumf %22, %23 : vector<128x4xf32>
    %25 = vector.extract_strided_slice %0 {offsets = [0, 0, 0], sizes = [8, 16, 4], strides = [1, 1, 1]} : vector<8x18x4xf32> to vector<8x16x4xf32>
    %26 = vector.extract_strided_slice %0 {offsets = [0, 1, 0], sizes = [8, 16, 4], strides = [1, 1, 1]} : vector<8x18x4xf32> to vector<8x16x4xf32>
    %27 = vector.extract_strided_slice %0 {offsets = [0, 2, 0], sizes = [8, 16, 4], strides = [1, 1, 1]} : vector<8x18x4xf32> to vector<8x16x4xf32>
    %28 = tpu.concatenate %25, %26, %27 in 2 : vector<8x16x4xf32>, vector<8x16x4xf32>, vector<8x16x4xf32> -> vector<8x16x12xf32>
    %29 = vector.shape_cast %28 : vector<8x16x12xf32> to vector<128x12xf32>
    %30 = tpu.concatenate %24, %29 in 1 : vector<128x4xf32>, vector<128x12xf32> -> vector<128x16xf32>
    %c0_16 = arith.constant 0 : index
    %c0_17 = arith.constant 0 : index
    %31 = vector.load %arg5[%c0_16, %c0_17] : memref<16x16xf32, #tpu.memory_space<vmem>>, vector<16x16xf32>
    %cst_18 = arith.constant dense<0.000000e+00> : vector<128x16xf32>
    %32 = tpu.matmul %30, %31, %cst_18 {dimension_numbers = #tpu.dot_dimension_numbers<[1], [0], [0], [1], [0, 0, 1, 1], [], []>} : vector<128x16xf32>, vector<16x16xf32>, vector<128x16xf32> -> vector<128x16xf32>
    %c0_19 = arith.constant 0 : index
    %c0_20 = arith.constant 0 : index
    %33 = vector.load %arg8[%c0_19, %c0_20] : memref<1x16xf32, #tpu.memory_space<vmem>>, vector<1x16xf32>
    %34 = vector.broadcast %33 : vector<1x16xf32> to vector<128x16xf32>
    %35 = arith.addf %32, %34 : vector<128x16xf32>
    %cst_21 = arith.constant 0.000000e+00 : f32
    %36 = vector.broadcast %cst_21 : f32 to vector<128x16xf32>
    %37 = arith.maximumf %35, %36 : vector<128x16xf32>
    %38 = vector.shape_cast %37 : vector<128x16xf32> to vector<8x16x16xf32>
    %c0_22 = arith.constant 0 : index
    %c0_23 = arith.constant 0 : index
    %c0_24 = arith.constant 0 : index
    %39 = vector.load %arg9[%c0_22, %c0_23, %c0_24] : memref<8x16x16xf32, #tpu.memory_space<vmem>>, vector<8x16x16xf32>
    tpu.vector_store %arg9[%c0_22, %c0_23, %c0_24], %38 {strides = array<i32>} : memref<8x16x16xf32, #tpu.memory_space<vmem>>, vector<8x16x16xf32>,
    return
  }
  func.func @transform_0(%arg0: i32) -> (i32, i32, i32) {
    %c0_i32 = arith.constant 0 : i32
    %c0_i32_0 = arith.constant 0 : i32
    %c0_i32_1 = arith.constant 0 : i32
    return %arg0, %c0_i32, %c0_i32_0 : i32, i32, i32
  }
  func.func @transform_1(%arg0: i32) -> (i32, i32, i32) {
    %c0_i32 = arith.constant 0 : i32
    %c0_i32_0 = arith.constant 0 : i32
    %c0_i32_1 = arith.constant 0 : i32
    %c0_i32_2 = arith.constant 0 : i32
    return %c0_i32, %c0_i32_0, %c0_i32_1 : i32, i32, i32
  }
  func.func @transform_2(%arg0: i32) -> (i32, i32) {
    %c0_i32 = arith.constant 0 : i32
    %c0_i32_0 = arith.constant 0 : i32
    %c0_i32_1 = arith.constant 0 : i32
    return %c0_i32, %c0_i32_0 : i32, i32
  }
  func.func @transform_3(%arg0: i32) -> (i32, i32) {
    %c0_i32 = arith.constant 0 : i32
    %c0_i32_0 = arith.constant 0 : i32
    %c0_i32_1 = arith.constant 0 : i32
    return %c0_i32, %c0_i32_0 : i32, i32
  }
  func.func @transform_4(%arg0: i32) -> (i32, i32) {
    %c0_i32 = arith.constant 0 : i32
    %c0_i32_0 = arith.constant 0 : i32
    %c0_i32_1 = arith.constant 0 : i32
    return %c0_i32, %c0_i32_0 : i32, i32
  }
  func.func @transform_5(%arg0: i32) -> (i32, i32) {
    %c0_i32 = arith.constant 0 : i32
    %c0_i32_0 = arith.constant 0 : i32
    %c0_i32_1 = arith.constant 0 : i32
    return %c0_i32, %c0_i32_0 : i32, i32
  }
  func.func @transform_6(%arg0: i32) -> (i32, i32) {
    %c0_i32 = arith.constant 0 : i32
    %c0_i32_0 = arith.constant 0 : i32
    %c0_i32_1 = arith.constant 0 : i32
    return %c0_i32, %c0_i32_0 : i32, i32
  }
  func.func @transform_7(%arg0: i32) -> (i32, i32) {
    %c0_i32 = arith.constant 0 : i32
    %c0_i32_0 = arith.constant 0 : i32
    %c0_i32_1 = arith.constant 0 : i32
    return %c0_i32, %c0_i32_0 : i32, i32
  }
  func.func @transform_8(%arg0: i32) -> (i32, i32, i32) {
    %c0_i32 = arith.constant 0 : i32
    %c0_i32_0 = arith.constant 0 : i32
    %c0_i32_1 = arith.constant 0 : i32
    return %arg0, %c0_i32, %c0_i32_0 : i32, i32, i32
  }
}

</mosaic_0001>

<bundles_post_ra>
// kernel: tpu_custom_call.1
= control target key start
LH: loop header
LB: loop body
LE: loop exit
PB: predicated region body
PF: predicated region fallthrough
CT: control target
= control target key end

     0   :  { %s3735_s27 = smov 0   ;;  %s5006_s0 = inlined_call_operand.vmem [shape: f32[32,18,4], index: 0, kind: input, shape index: {}]   ;;  %s5007_s1 = inlined_call_operand.vmem [shape: f32[1,18,4], index: 1, kind: input, shape index: {}]   ;;  %s5008_s2 = inlined_call_operand.vmem [shape: f32[4,4], index: 2, kind: input, shape index: {}]   ;;  %s5009_s3 = inlined_call_operand.vmem [shape: f32[12,4], index: 3, kind: input, shape index: {}]   ;;  %s5010_s4 = inlined_call_operand.vmem [shape: f32[16,16], index: 4, kind: input, shape index: {}]   ;;  %s5011_s5 = inlined_call_operand.vmem [shape: f32[1,4], index: 5, kind: input, shape index: {}]   ;;  %s5012_s6 = inlined_call_operand.vmem [shape: f32[1,4], index: 6, kind: input, shape index: {}]   ;;  %s5013_s7 = inlined_call_operand.vmem [shape: f32[1,16], index: 7, kind: input, shape index: {}]   ;;  %s5014_s8 = inlined_call_operand.vmem [shape: f32[32,16,16], index: 8, kind: output, shape index: {}]  }
   0x1 LB: > { %s3404_s28 = sadd.s32 4294967295, %s3685_s27   ;;  %p3408_p0 = scmp.ge.s32.totalorder %s3685_s27, 1  ;;  %s3685_s27 = sphi %s3735_s27, %s18_s27  }
   0x2   : > { %p264_p1 = scmp.lt.s32.totalorder %s3685_s27, 5 }
   0x4   : > { %p265_p2 = pnand %p3408_p0, %p264_p1 }
   0x6   : > { %268 = sbr.rel (%p265_p2) target bundleno = 860 (0x35c), region = 52 }
   0xb   : > { %v690_v0 = vld [vmem:[%s5008_s2] sm:$0xf]  ;;  %vm1041_vm0 = vcmask 1043456   ;;  %s3409_s9 = sshll.u32 %s3404_s28, 3  ;;  %v366_v1 = vlaneseq  ;;  %v3687_v2 = vmov 1983009808  }
   0xc   : > { %3528 = vmatprep.subr.msk.mxu0 %vm1041_vm0, %v690_v0  ;;  %p301_p3 = scmp.lt.s32.totalorder %s3409_s9, 31  ;;  %v364_v3 = vunpack.c.l.s4 %v3687_v2  ;;  %vm1004_vm1 = vcmask 31744   ;;  %vm2158_vm2 = vcmask 1046528   ;;  %s3688_s26 = smov 8   ;;  %vm2910_vm3 = vcmask 1045504  }
   0xd   : > { %3529 = vmatpush3.msk.msra.mxu0 %vm1041_vm0, %v690_v0  ;;  %v367_v4 = vshrl.u32 %v366_v1, 7  ;;  %s3689_s28 = smov 4   ;;  %vm2583_vm4 = vcmask 64512   ;;  %vm2609_vm5 = vcmask 97280   ;;  %vm3120_vm6 = vcmask 130048  }
   0xe   : > { %s5063_s9 = smov (!%p301_p3, %s3409_s9), 31  ;;  %v365_v5 = vunpack.c.0.s8 %v364_v3 }
   0xf   : > { %s3617_s10 = smul.u32 24, %s5063_s9  ;;  %s3472_s16 = sshll.u32 %s5063_s9, 4 }
  0x10   : > { %v3751_v6 = vsub.s32 %v365_v5, %v367_v4  ;;  %s4954_s19 = scalar_lea.vmem %s5014_s8, %s3472_s16 }
  0x11   : > { %s3756_s13 = scalar_lea.vmem %s5006_s0, %s3617_s10 }
  0x12   : > { %v314_v7 = vld [vmem:[%s3756_s13] sm:$0xff]  ;;  %v315_v8 = vld [vmem:[%s3756_s13 + $0x8] sm:$0xff]  ;;  %v3671_v9 = vld.sshfl [vmem:[%s3756_s13 + $0x10] sm:$0x3 pattern:$0x76325410] }
  0x13   : > { %v362_v10 = vcombine.high %v314_v7, %v314_v7  ;;  %v369_v11 = vrot.slane %v314_v7, %v3751_v6  ;;  %v379_v12 = vcombine.high %v315_v8, %v315_v8  ;;  %v386_v13 = vrot.slane %v315_v8, %v3751_v6  ;;  %v317_v14 = vld [vmem:[%s3756_s13 + $0x18] sm:$0xff]  ;;  %v318_v15 = vld [vmem:[%s3756_s13 + $0x20] sm:$0xff]  ;;  %v3672_v35 = vld.sshfl [vmem:[%s3756_s13 + $0x28] sm:$0x3 pattern:$0x76325410] }
  0x14   : > { %v403_v16 = vcombine.high %v317_v14, %v317_v14  ;;  %v410_v17 = vrot.slane %v317_v14, %v3751_v6  ;;  %v420_v18 = vcombine.high %v318_v15, %v318_v15  ;;  %v427_v26 = vrot.slane %v318_v15, %v3751_v6  ;;  %v320_v36 = vld [vmem:[%s3756_s13 + $0x30] sm:$0xff]  ;;  %v321_v48 = vld [vmem:[%s3756_s13 + $0x38] sm:$0xff]  ;;  %v3673_v53 = vld.sshfl [vmem:[%s3756_s13 + $0x40] sm:$0x3 pattern:$0x76325410] }
  0x15   : > { %v376_v19 = vrot.slane %v362_v10, %v3751_v6  ;;  %v377_v20 = vcombine.high %v369_v11, %v369_v11  ;;  %v393_v21 = vrot.slane %v379_v12, %v3751_v6  ;;  %v394_v22 = vcombine.high %v386_v13, %v386_v13  ;;  %v323_v61 = vld [vmem:[%s3756_s13 + $0x48] sm:$0xff]  ;;  %v324_v2 = vld [vmem:[%s3756_s13 + $0x50] sm:$0xff] }
  0x16   : > { %v417_v23 = vrot.slane %v403_v16, %v3751_v6  ;;  %v418_v24 = vcombine.high %v410_v17, %v410_v17  ;;  %v732_v25 = vcombine.low %v3671_v9, %v410_v17  ;;  %v434_v34 = vrot.slane %v420_v18, %v3751_v6  ;;  %v3674_v16 = vld.sshfl [vmem:[%s3756_s13 + $0x58] sm:$0x3 pattern:$0x76325410] }
  0x17   : > { %v378_v27 = vcombine.high %v376_v19, %v376_v19  ;;  %v698_v28 = vcombine.low %v369_v11, %v377_v20  ;;  %v395_v29 = vcombine.high %v393_v21, %v393_v21  ;;  %v715_v30 = vcombine.low %v386_v13, %v394_v22 }
  0x18   : > { %v733_v31 = vcombine.low %v418_v24, %v417_v23  ;;  %v740_v32 = vrot.slane %v732_v25, %v3751_v6  ;;  %v419_v33 = vcombine.high %v417_v23, %v417_v23  ;;  %v435_v42 = vcombine.high %v427_v26, %v427_v26 }
  0x19   : > { %v699_v37 = vcombine.low %v376_v19, %v378_v27  ;;  %v706_v38 = vrot.slane %v698_v28, %v3751_v6  ;;  %v716_v39 = vcombine.low %v393_v21, %v395_v29  ;;  %v723_v40 = vrot.slane %v715_v30, %v3751_v6  ;;  %v326_v21 = vld [vmem:[%s3756_s13 + $0x60] sm:$0xff]  ;;  %v327_v29 = vld [vmem:[%s3756_s13 + $0x68] sm:$0xff] }
  0x1a   : > { %v747_v41 = vrot.slane %v733_v31, %v3751_v6  ;;  %v749_v43 = vcombine.low %v419_v33, %v427_v26  ;;  %v436_v44 = vcombine.high %v434_v34, %v434_v34  ;;  %v451_v47 = vrot.slane %v320_v36, %v3751_v6 }
  0x1b   : > { %v713_v45 = vrot.slane %v699_v37, %v3751_v6  ;;  %v730_v46 = vrot.slane %v716_v39, %v3751_v6  ;;  %v750_v50 = vcombine.low %v435_v42, %v434_v34  ;;  %v444_v52 = vcombine.high %v320_v36, %v320_v36 }
  0x1c   : > { %v748_v49 = vcombine.low %v740_v32, %v747_v41  ;;  %v757_v51 = vrot.slane %v749_v43, %v3751_v6  ;;  %v459_v56 = vcombine.high %v451_v47, %v451_v47  ;;  %v766_v57 = vcombine.low %v436_v44, %v3672_v35  ;;  %v329_v43 = vld [vmem:[%s3756_s13 + $0x78] sm:$0xff] }
  0x1d   : > { %v714_v54 = vcombine.low %v706_v38, %v713_v45  ;;  %v731_v55 = vcombine.low %v723_v40, %v730_v46  ;;  %v764_v58 = vrot.slane %v750_v50, %v3751_v6  ;;  %v458_v59 = vrot.slane %v444_v52, %v3751_v6  ;;  %v3675_v38 = vld.sshfl [vmem:[%s3756_s13 + $0x70] sm:$0x3 pattern:$0x76325410] }
  0x1e   : > { %v468_v60 = vrot.slane %v321_v48, %v3751_v6  ;;  %v461_v62 = vcombine.high %v321_v48, %v321_v48  ;;  %v767_v63 = vcombine.low %v451_v47, %v459_v56  ;;  %v774_v0 = vrot.slane %v766_v57, %v3751_v6 }
  0x1f   : > { %3530 = vmatprep.mubr.msk.f32.mxu0 %vm1004_vm1, %v714_v54  ;;  %v492_v1 = vrot.slane %v323_v61, %v3751_v6  ;;  %v765_v3 = vcombine.low %v757_v51, %v764_v58  ;;  %v460_v4 = vcombine.high %v458_v59, %v458_v59  ;;  %v485_v10 = vcombine.high %v323_v61, %v323_v61  ;;  %v330_v51 = vld [vmem:[%s3756_s13 + $0x80] sm:$0xff] }
  0x20   : > { %3531 = vmatmul.mubr.msk.f32.vlgmr.msra.gmra.mxu0 %vm1004_vm1, %v731_v55  ;;  %v476_v5 = vcombine.high %v468_v60, %v468_v60  ;;  %v475_v7 = vrot.slane %v461_v62, %v3751_v6  ;;  %v781_v8 = vrot.slane %v767_v63, %v3751_v6  ;;  %v509_v15 = vrot.slane %v324_v2, %v3751_v6 }
  0x21   : > { %3533 = vmatprep.mubr.msk.f32.mxu0 %vm1004_vm1, %v748_v49  ;;  %v801_v9 = vcombine.low %v3673_v53, %v492_v1  ;;  %v500_v11 = vcombine.high %v492_v1, %v492_v1  ;;  %v783_v12 = vcombine.low %v458_v59, %v460_v4  ;;  %v499_v19 = vrot.slane %v485_v10, %v3751_v6  ;;  %v3676_v4 = vld.sshfl [vmem:[%s3756_s13 + $0x88] sm:$0x3 pattern:$0x76325410]  ;;  %v332_v10 = vld [vmem:[%s3756_s13 + $0x90] sm:$0xff] }
  0x22   : > { %v784_v13 = vcombine.low %v468_v60, %v476_v5  ;;  %v477_v14 = vcombine.high %v475_v7, %v475_v7  ;;  %v782_v17 = vcombine.low %v774_v0, %v781_v8  ;;  %v502_v20 = vcombine.high %v324_v2, %v324_v2 }
  0x23   : > { %v815_v18 = vrot.slane %v801_v9, %v3751_v6  ;;  %v791_v22 = vrot.slane %v783_v12, %v3751_v6  ;;  %v517_v25 = vcombine.high %v509_v15, %v509_v15  ;;  %v501_v26 = vcombine.high %v499_v19, %v499_v19 }
  0x24   : > { %3534 = vmatmul.mubr.msk.f32.gmra.mxu0 %vm1004_vm1, %v765_v3  ;;  %v798_v23 = vrot.slane %v784_v13, %v3751_v6  ;;  %v800_v24 = vcombine.low %v475_v7, %v477_v14  ;;  %v817_v27 = vcombine.low %v500_v11, %v499_v19  ;;  %v516_v28 = vrot.slane %v502_v20, %v3751_v6 }
  0x25   : > { %3536 = vmatprep.mubr.msk.f32.mxu0 %vm1004_vm1, %v782_v17  ;;  %v526_v32 = vcombine.high %v326_v21, %v326_v21  ;;  %v533_v33 = vrot.slane %v326_v21, %v3751_v6  ;;  %v818_v34 = vcombine.low %v501_v26, %v509_v15  ;;  %v543_v42 = vcombine.high %v327_v29, %v327_v29  ;;  %v333_v15 = vld [vmem:[%s3756_s13 + $0x98] sm:$0xff] }
  0x26   : > { %v799_v30 = vcombine.low %v791_v22, %v798_v23  ;;  %v808_v31 = vrot.slane %v800_v24, %v3751_v6  ;;  %v825_v35 = vrot.slane %v817_v27, %v3751_v6  ;;  %v518_v36 = vcombine.high %v516_v28, %v516_v28  ;;  %v3677_v23 = vld.sshfl [vmem:[%s3756_s13 + $0xa0] sm:$0x3 pattern:$0x76325410] }
  0x27   : > { %v834_v37 = vcombine.low %v517_v25, %v516_v28  ;;  %v540_v40 = vrot.slane %v526_v32, %v3751_v6  ;;  %v541_v41 = vcombine.high %v533_v33, %v533_v33  ;;  %v832_v44 = vrot.slane %v818_v34, %v3751_v6  ;;  %v335_v28 = vld [vmem:[%s3756_s13 + $0xa8] sm:$0xff] }
  0x28   : > { %3537 = vmatmul.mubr.msk.f32.gmra.mxu0 %vm1004_vm1, %v799_v30  ;;  %v816_v39 = vcombine.low %v808_v31, %v815_v18  ;;  %v835_v45 = vcombine.low %v518_v36, %v3674_v16  ;;  %v550_v47 = vrot.slane %v327_v29, %v3751_v6  ;;  %v557_v50 = vrot.slane %v543_v42, %v3751_v6 }
  0x29   : > { %v842_v46 = vrot.slane %v834_v37, %v3751_v6  ;;  %v542_v48 = vcombine.high %v540_v40, %v540_v40  ;;  %v851_v49 = vcombine.low %v533_v33, %v541_v41  ;;  %v833_v52 = vcombine.low %v825_v35, %v832_v44 }
  0x2a   : > { %3539 = vmatprep.mubr.msk.f32.mxu0 %vm1004_vm1, %v816_v39  ;;  %v849_v53 = vrot.slane %v835_v45, %v3751_v6  ;;  %v558_v54 = vcombine.high %v550_v47, %v550_v47  ;;  %v567_v55 = vcombine.high %v329_v43, %v329_v43  ;;  %v559_v58 = vcombine.high %v557_v50, %v557_v50 }
  0x2b   : > { %v852_v56 = vcombine.low %v540_v40, %v542_v48  ;;  %v859_v57 = vrot.slane %v851_v49, %v3751_v6  ;;  %v574_v59 = vrot.slane %v329_v43, %v3751_v6  ;;  %v584_v63 = vcombine.high %v330_v51, %v330_v51  ;;  %v336_v40 = vld [vmem:[%s3756_s13 + $0xb0] sm:$0xff] }
  0x2c   : > { %3540 = vmatmul.mubr.msk.f32.gmra.mxu0 %vm1004_vm1, %v833_v52  ;;  %v850_v60 = vcombine.low %v842_v46, %v849_v53  ;;  %v868_v61 = vcombine.low %v550_v47, %v558_v54  ;;  %v581_v62 = vrot.slane %v567_v55, %v3751_v6  ;;  %v869_v1 = vcombine.low %v557_v50, %v559_v58  ;;  %v3678_v52 = vld.sshfl [vmem:[%s3756_s13 + $0xb8] sm:$0x3 pattern:$0x76325410] }
  0x2d   : > { %v866_v0 = vrot.slane %v852_v56, %v3751_v6  ;;  %v582_v2 = vcombine.high %v574_v59, %v574_v59  ;;  %v885_v3 = vcombine.low %v3675_v38, %v574_v59  ;;  %v591_v8 = vrot.slane %v330_v51, %v3751_v6 }
  0x2e   : > { %3542 = vmatprep.mubr.msk.f32.mxu0 %vm1004_vm1, %v850_v60  ;;  %v876_v5 = vrot.slane %v868_v61, %v3751_v6  ;;  %v583_v7 = vcombine.high %v581_v62, %v581_v62  ;;  %v598_v9 = vrot.slane %v584_v63, %v3751_v6  ;;  %v883_v12 = vrot.slane %v869_v1, %v3751_v6 }
  0x2f   : > { %v867_v11 = vcombine.low %v859_v57, %v866_v0  ;;  %v886_v13 = vcombine.low %v582_v2, %v581_v62  ;;  %v893_v14 = vrot.slane %v885_v3, %v3751_v6  ;;  %v599_v16 = vcombine.high %v591_v8, %v591_v8 }
  0x30   : > { %v902_v17 = vcombine.low %v583_v7, %v591_v8  ;;  %v600_v18 = vcombine.high %v598_v9, %v598_v9  ;;  %v884_v19 = vcombine.low %v876_v5, %v883_v12  ;;  %v615_v21 = vrot.slane %v332_v10, %v3751_v6  ;;  %v3871_v12 = vld [vmem:[%s5011_s5] ss:$0 sm:$0xff] }
  0x31   : > { %3543 = vmatmul.mubr.msk.f32.gmra.mxu0 %vm1004_vm1, %v867_v11  ;;  %v900_v20 = vrot.slane %v886_v13, %v3751_v6  ;;  %v608_v22 = vcombine.high %v332_v10, %v332_v10  ;;  %v903_v24 = vcombine.low %v599_v16, %v598_v9  ;;  %v632_v27 = vrot.slane %v333_v15, %v3751_v6 }
  0x32   : > { %v910_v25 = vrot.slane %v902_v17, %v3751_v6  ;;  %v919_v26 = vcombine.low %v600_v18, %v3676_v4  ;;  %3545 = vmatprep.mubr.msk.f32.mxu0 %vm1004_vm1, %v884_v19  ;;  %v623_v30 = vcombine.high %v615_v21, %v615_v21  ;;  %v625_v32 = vcombine.high %v333_v15, %v333_v15  ;;  %v1615_v17 = vld [vmem:[%s5007_s1 + $0x8] sm:$0xff]  ;;  %v1614_v19 = vld [vmem:[%s5007_s1] sm:$0xff] }
  0x33   : > { %v901_v29 = vcombine.low %v893_v14, %v900_v20  ;;  %v622_v31 = vrot.slane %v608_v22, %v3751_v6  ;;  %v917_v33 = vrot.slane %v903_v24, %v3751_v6  ;;  %v640_v35 = vcombine.high %v632_v27, %v632_v27 }
  0x34   : > { %v927_v34 = vrot.slane %v919_v26, %v3751_v6  ;;  %v920_v36 = vcombine.low %v615_v21, %v623_v30  ;;  %v639_v38 = vrot.slane %v625_v32, %v3751_v6  ;;  %v656_v39 = vrot.slane %v335_v28, %v3751_v6 }
  0x35   : > { %3546 = vmatmul.mubr.msk.f32.gmra.mxu0 %vm1004_vm1, %v901_v29  ;;  %v624_v37 = vcombine.high %v622_v31, %v622_v31  ;;  %v918_v41 = vcombine.low %v910_v25, %v917_v33  ;;  %v937_v42 = vcombine.low %v632_v27, %v640_v35  ;;  %v649_v43 = vcombine.high %v335_v28, %v335_v28 }
  0x36   : > { %v673_v44 = vrot.slane %v336_v40, %v3751_v6  ;;  %v934_v45 = vrot.slane %v920_v36, %v3751_v6  ;;  %v641_v47 = vcombine.high %v639_v38, %v639_v38  ;;  %v954_v48 = vcombine.low %v3677_v23, %v656_v39 }
  0x37   : > { %v936_v46 = vcombine.low %v622_v31, %v624_v37  ;;  %3548 = vmatprep.mubr.msk.f32.mxu0 %vm1004_vm1, %v918_v41  ;;  %v951_v49 = vrot.slane %v937_v42, %v3751_v6  ;;  %v663_v50 = vrot.slane %v649_v43, %v3751_v6  ;;  %v664_v51 = vcombine.high %v656_v39, %v656_v39 }
  0x38   : > { %v666_v53 = vcombine.high %v336_v40, %v336_v40  ;;  %v935_v54 = vcombine.low %v927_v34, %v934_v45  ;;  %v953_v56 = vcombine.low %v639_v38, %v641_v47  ;;  %v968_v57 = vrot.slane %v954_v48, %v3751_v6 }
  0x39   : > { %v944_v55 = vrot.slane %v936_v46, %v3751_v6  ;;  %v665_v58 = vcombine.high %v663_v50, %v663_v50  ;;  %v970_v59 = vcombine.low %v664_v51, %v663_v50  ;;  %v681_v61 = vcombine.high %v673_v44, %v673_v44 }
  0x3a   : > { %v680_v60 = vrot.slane %v666_v53, %v3751_v6  ;;  %3549 = vmatmul.mubr.msk.f32.gmra.mxu0 %vm1004_vm1, %v935_v54  ;;  %v961_v63 = vrot.slane %v953_v56, %v3751_v6  ;;  %v1637_v24 = vcombine.high %v1615_v17, %v1615_v17  ;;  %v1620_v26 = vcombine.high %v1614_v19, %v1614_v19 }
  0x3b   : > { %v952_v62 = vcombine.low %v944_v55, %v951_v49  ;;  %v971_v0 = vcombine.low %v665_v58, %v673_v44  ;;  %v978_v1 = vrot.slane %v970_v59, %v3751_v6  ;;  %v3883_v27 = vrot.slane %v1614_v19, %v3751_v6 }
  0x3c   : > { %v682_v2 = vcombine.high %v680_v60, %v680_v60  ;;  %v987_v3 = vcombine.low %v681_v61, %v680_v60  ;;  %v969_v4 = vcombine.low %v961_v63, %v968_v57  ;;  %v3887_v29 = vrot.slane %v1615_v17, %v3751_v6 }
  0x3d   : > { %3551 = vmatprep.mubr.msk.f32.mxu0 %vm1004_vm1, %v952_v62  ;;  %v985_v5 = vrot.slane %v971_v0, %v3751_v6  ;;  %v3893_v35 = vrot.slane %v1637_v24, %v3751_v6  ;;  %v3896_v38 = vrot.slane %v1620_v26, %v3751_v6  ;;  %v3900_v39 = vcombine.high %v3883_v27, %v3883_v27 }
  0x3e   : > { %v988_v7 = vcombine.low %v682_v2, %v3678_v52  ;;  %v995_v8 = vrot.slane %v987_v3, %v3751_v6  ;;  %3552 = vmatmul.mubr.msk.f32.gmra.mxu0 %vm1004_vm1, %v969_v4  ;;  %v3905_v42 = vcombine.high %v3887_v29, %v3887_v29 }
  0x3f   : > { %v986_v9 = vcombine.low %v978_v1, %v985_v5  ;;  %v3911_v49 = vcombine.high %v3893_v35, %v3893_v35  ;;  %v3918_v52 = vcombine.high %v3896_v38, %v3896_v38 }
  0x40   : > { %v1002_v10 = vrot.slane %v988_v7, %v3751_v6 }
  0x41   : > { %3554 = vmatprep.mubr.msk.f32.mxu0 %vm1004_vm1, %v986_v9 }
  0x42   : > { %v1003_v11 = vcombine.low %v995_v8, %v1002_v10  ;;  %v3952_v8 = vld.sshfl [vmem:[%s5007_s1 + $0x10] sm:$0x3 pattern:$0x76325410] }
  0x44   : > { %3555 = vmatmul.mubr.msk.f32.gmra.mxu0 %vm1004_vm1, %v1003_v11 }
  0xe0   : > { %v3532_v13 = vpop.f32.mrf.mxu0 }
  0xe1   : > { %v1117_v14 = vadd.f32 %v3532_v13, %v3871_v12 }
  0xe2   : > { %v1111_v15 = vpop.f32.mrf.mxu0 }
  0xe3   : > { %v1201_v16 = vmax.f32 %v1117_v14, 0.0  ;;  %v1112_v18 = vadd.f32 %v3871_v12, %v1111_v15 }
  0xe4   : > { %v3535_v20 = vpop.f32.mrf.mxu0 }
  0xe5   : > { %v1200_v21 = vmax.f32 %v1112_v18, 0.0  ;;  %v1127_v22 = vadd.f32 %v3535_v20, %v3871_v12  ;;  %v1253_v23 = vcombine.high %v1201_v16, %v1201_v16  ;;  %v1260_v28 = vrot.slane %v1201_v16, %v3751_v6 }
  0xe6   : > { %v1121_v25 = vpop.f32.mrf.mxu0 }
  0xe7   : > { %v1243_v30 = vrot.slane %v1200_v21, %v3751_v6  ;;  %v1203_v31 = vmax.f32 %v1127_v22, 0.0  ;;  %v1122_v33 = vadd.f32 %v3871_v12, %v1121_v25  ;;  %v1267_v34 = vrot.slane %v1253_v23, %v3751_v6 }
  0xe8   : > { %v3538_v32 = vpop.f32.mrf.mxu0  ;;  %v1268_v41 = vcombine.high %v1260_v28, %v1260_v28  ;;  %v1236_v44 = vcombine.high %v1200_v21, %v1200_v21  ;;  %v3929_v61 = vmul.f32 %v3887_v29, %v1260_v28 }
  0xe9   : > { %v1251_v37 = vcombine.high %v1243_v30, %v1243_v30  ;;  %v1294_v40 = vrot.slane %v1203_v31, %v3751_v6  ;;  %v1287_v43 = vcombine.high %v1203_v31, %v1203_v31  ;;  %v1202_v45 = vmax.f32 %v1122_v33, 0.0 }
  0xea   : > { %v1131_v36 = vpop.f32.mrf.mxu0  ;;  %v1137_v46 = vadd.f32 %v3538_v32, %v3871_v12  ;;  %v1269_v48 = vcombine.high %v1267_v34, %v1267_v34  ;;  %v3922_v57 = vmul.f32 %v3905_v42, %v1268_v41  ;;  %v3925_v58 = vrot.slane %v1236_v44, %v3751_v6 }
  0xeb   : > { %v1132_v47 = vadd.f32 %v3871_v12, %v1131_v36  ;;  %v3914_v50 = vmul.f32 %v3900_v39, %v1251_v37  ;;  %v1302_v51 = vcombine.high %v1294_v40, %v1294_v40  ;;  %v1301_v53 = vrot.slane %v1287_v43, %v3751_v6 }
  0xec   : > { %v1270_v54 = vcombine.high %v1202_v45, %v1202_v45  ;;  %v1205_v55 = vmax.f32 %v1137_v46, 0.0  ;;  %v3541_v56 = vpop.f32.mrf.mxu0  ;;  %v1670_v59 = vmul.f32 %v3883_v27, %v1243_v30  ;;  %v3932_v62 = vmul.f32 %v3893_v35, %v1267_v34 }
  0xed   : > { %v1204_v60 = vmax.f32 %v1132_v47, 0.0  ;;  %v3935_v63 = vmul.f32 %v3911_v49, %v1269_v48  ;;  %v1277_v0 = vrot.slane %v1202_v45, %v3751_v6  ;;  %v3940_v2 = vmul.f32 %v3918_v52, %v1294_v40  ;;  %v2601_v48 = vld [vmem:[%s5009_s3 + $0x8] sm:$0xf] }
  0xee   : > { %v1806_v1 = vcombine.low %v1670_v59, %v3914_v50  ;;  %v3943_v3 = vmul.f32 %v3887_v29, %v1302_v51  ;;  %v3946_v4 = vmul.f32 %v3905_v42, %v1301_v53  ;;  %v1303_v5 = vcombine.high %v1301_v53, %v1301_v53  ;;  %v1141_v11 = vpop.f32.mrf.mxu0  ;;  %3557 = vmatprep.subr.msk.mxu0 %vm1041_vm0, %v2601_v48 }
  0xef   : > { %v1284_v7 = vrot.slane %v1270_v54, %v3751_v6  ;;  %v1321_v9 = vcombine.high %v1205_v55, %v1205_v55  ;;  %v1328_v10 = vrot.slane %v1205_v55, %v3751_v6  ;;  %v1823_v13 = vcombine.low %v3929_v61, %v3922_v57  ;;  %3558 = vmatpush3.msk.msra.mxu0 %vm1041_vm0, %v2601_v48 }
  0xf0   : > { %v1252_v14 = vcombine.high %v3925_v58, %v3925_v58  ;;  %v1304_v15 = vcombine.high %v1204_v60, %v1204_v60  ;;  %v1311_v16 = vrot.slane %v1204_v60, %v3751_v6  ;;  %v3964_v18 = vmul.f32 %v3896_v38, %v3925_v58  ;;  %3613 = vmatprep.subr.msk.mxu1 %vm1041_vm0, %v2601_v48 }
  0xf1   : > { %v1285_v19 = vcombine.high %v1277_v0, %v1277_v0  ;;  %v1147_v20 = vadd.f32 %v3541_v56, %v3871_v12  ;;  %v3968_v21 = vrot.slane %v1806_v1, %v3751_v6  ;;  %v3975_v24 = vmul.f32 %v3952_v8, %v1277_v0  ;;  %v3544_v31 = vpop.f32.mrf.mxu0  ;;  %3615 = vmatpush3.msk.msra.mxu1 %vm1041_vm0, %v2601_v48 }
  0xf2   : > { %v1286_v25 = vcombine.high %v1284_v7, %v1284_v7  ;;  %v1335_v26 = vrot.slane %v1321_v9, %v3751_v6  ;;  %v1336_v28 = vcombine.high %v1328_v10, %v1328_v10  ;;  %v3979_v30 = vmul.f32 %v3893_v35, %v1303_v5 }
  0xf3   : > { %v1318_v32 = vrot.slane %v1304_v15, %v3751_v6  ;;  %v1319_v33 = vcombine.high %v1311_v16, %v1311_v16  ;;  %v1142_v34 = vadd.f32 %v3871_v12, %v1141_v11  ;;  %v1157_v36 = vadd.f32 %v3544_v31, %v3871_v12  ;;  %v1151_v56 = vpop.f32.mrf.mxu0 }
  0xf4   : > { %v3985_v37 = vmul.f32 %v3883_v27, %v1285_v19  ;;  %v3988_v40 = vmul.f32 %v3900_v39, %v1284_v7  ;;  %v3991_v41 = vmul.f32 %v3911_v49, %v1311_v16  ;;  %v1207_v43 = vmax.f32 %v1147_v20, 0.0 }
  0xf5   : > { %v3996_v45 = vmul.f32 %v3896_v38, %v1328_v10  ;;  %v1206_v46 = vmax.f32 %v1142_v34, 0.0  ;;  %v1209_v47 = vmax.f32 %v1157_v36, 0.0  ;;  %v4002_v51 = vmul.f32 %v3896_v38, %v1286_v25 }
  0xf6   : > { %v1337_v53 = vcombine.high %v1335_v26, %v1335_v26  ;;  %v4005_v54 = vmul.f32 %v3918_v52, %v1336_v28  ;;  %v1362_v55 = vrot.slane %v1207_v43, %v3751_v6  ;;  %v1320_v59 = vcombine.high %v1318_v32, %v1318_v32 }
  0xf7   : > { %v4010_v60 = vmul.f32 %v3952_v8, %v1319_v33  ;;  %v1338_v0 = vcombine.high %v1206_v46, %v1206_v46  ;;  %v1345_v1 = vrot.slane %v1206_v46, %v3751_v6  ;;  %v1858_v5 = vcombine.low %v3979_v30, %v3991_v41 }
  0xf8   : > { %v1355_v7 = vcombine.high %v1207_v43, %v1207_v43  ;;  %v1389_v9 = vcombine.high %v1209_v47, %v1209_v47  ;;  %v1396_v10 = vrot.slane %v1209_v47, %v3751_v6  ;;  %v4021_v15 = vmul.f32 %v3887_v29, %v1335_v26 }
  0xf9   : > { %v1353_v16 = vcombine.high %v1345_v1, %v1345_v1  ;;  %v1152_v19 = vadd.f32 %v3871_v12, %v1151_v56  ;;  %v4028_v25 = vmul.f32 %v3905_v42, %v1337_v53  ;;  %v4031_v28 = vmul.f32 %v3883_v27, %v1318_v32 }
  0xfa   : > { %v1370_v31 = vcombine.high %v1362_v55, %v1362_v55  ;;  %v1875_v33 = vcombine.low %v3996_v45, %v4005_v54  ;;  %v1352_v26 = vrot.slane %v1338_v0, %v3751_v6  ;;  %v1403_v34 = vrot.slane %v1389_v9, %v3751_v6 }
  0xfb   : > { %v1404_v36 = vcombine.high %v1396_v10, %v1396_v10  ;;  %v4038_v43 = vmul.f32 %v3900_v39, %v1320_v59  ;;  %v4041_v46 = vrot.slane %v1858_v5, %v3751_v6  ;;  %v1369_v32 = vrot.slane %v1355_v7, %v3751_v6 }
  0xfc   : > { %v1354_v48 = vcombine.high %v1352_v26, %v1352_v26  ;;  %v4047_v53 = vmul.f32 %v3893_v35, %v1345_v1  ;;  %v4050_v56 = vmul.f32 %v3911_v49, %v1353_v16  ;;  %v1208_v0 = vmax.f32 %v1152_v19, 0.0 }
  0xfd   : > { %v4053_v9 = vmul.f32 %v3900_v39, %v1362_v55  ;;  %v4056_v59 = vmul.f32 %v3896_v38, %v1370_v31  ;;  %v4059_v5 = vmul.f32 %v3918_v52, %v1369_v32  ;;  %v1673_v7 = vmul.f32 %v3918_v52, %v1252_v14  ;;  %v3547_v31 = vpop.f32.mrf.mxu0 }
  0xfe   : > { %v4066_v1 = vrot.slane %v1875_v33, %v3751_v6  ;;  %v1405_v16 = vcombine.high %v1403_v34, %v1403_v34  ;;  %v4069_v19 = vmul.f32 %v3883_v27, %v1396_v10  ;;  %v4072_v55 = vmul.f32 %v3900_v39, %v1404_v36 }
  0xff   : > { %v1371_v58 = vcombine.high %v1369_v32, %v1369_v32  ;;  %v2247_v14 = vcombine.low %v3914_v50, %v3964_v18  ;;  %v4081_v33 = vmul.f32 %v3883_v27, %v1354_v48  ;;  %v1892_v10 = vcombine.low %v4047_v53, %v4050_v56  ;;  %v1161_v47 = vpop.f32.mrf.mxu0 }
 0x100   : > { %5023 = vst [vmem:[#allocation2_spill] sm:$0xff] %v4072_v55  ;;  %v1372_v22 = vcombine.high %v1208_v0, %v1208_v0  ;;  %v1167_v36 = vadd.f32 %v3547_v31, %v3871_v12  ;;  %v4091_v32 = vmul.f32 %v3952_v8, %v1352_v26  ;;  %v2248_v50 = vcombine.low %v1673_v7, %v3929_v61 }
 0x101   : > { %v4097_v23 = vmul.f32 %v3896_v38, %v1403_v34  ;;  %v4100_v31 = vmul.f32 %v3918_v52, %v1405_v16  ;;  %v1942_v20 = vcombine.low %v4069_v19, %v4072_v55  ;;  %v1379_v11 = vrot.slane %v1208_v0, %v3751_v6  ;;  %v2600_v34 = vld [vmem:[%s5009_s3] sm:$0xff] }
 0x102   : > { %v4106_v26 = vmul.f32 %v3887_v29, %v1371_v58  ;;  %v2255_v44 = vrot.slane %v2247_v14, %v3751_v6  ;;  %v2262_v17 = vrot.slane %v2248_v50, %v3751_v6  ;;  %v4114_v16 = vrot.slane %v1892_v10, %v3751_v6  ;;  %3559 = vmatprep.subr.mxu0 %v2600_v34 }
 0x103   : > { %v1386_v48 = vrot.slane %v1372_v22, %v3751_v6  ;;  %v1807_v0 = vcombine.low %v3964_v18, %v1673_v7  ;;  %v1162_v14 = vadd.f32 %v3871_v12, %v1161_v47  ;;  %v1831_v50 = vrot.slane %v1823_v13, %v3751_v6  ;;  %3560 = vmatpush3.msra.mxu0 %v2600_v34 }
 0x104   : > { %v2263_v58 = vcombine.low %v2255_v44, %v2262_v17  ;;  %v5024_v10 = vcombine.low %v3932_v62, %v3935_v63  ;;  %v1211_v19 = vmax.f32 %v1167_v36, 0.0  ;;  %v2108_v22 = vrot.slane %v3975_v24, %v3751_v6  ;;  %3614 = vmatprep.subr.mxu1 %v2600_v34  ;;  %v3550_v36 = vpop.f32.mrf.mxu0 }
 0x105   : > { %v2264_v17 = vcombine.low %v3922_v57, %v3932_v62  ;;  %v5025_v18 = vcombine.low %v3935_v63, %v3975_v24  ;;  %v1210_v13 = vmax.f32 %v1162_v14, 0.0  ;;  %v1821_v7 = vrot.slane %v1807_v0, %v3751_v6  ;;  %3616 = vmatpush3.msra.mxu1 %v2600_v34 }
 0x106   : > { %v1838_v55 = vrot.slane %v5024_v10, %v3751_v6  ;;  %2519 = vrot.lane.b32.xlu1 %v2263_v58, %s3688_s26  ;;  %v1387_v57 = vcombine.high %v1379_v11, %v1379_v11  ;;  %v1177_v63 = vadd.f32 %v3550_v36, %v3871_v12  ;;  %v2298_v24 = vcombine.low %v3946_v4, %v3979_v30 }
 0x107   : > { %v2279_v44 = vrot.slane %v5025_v18, %v3751_v6  ;;  %v2272_v62 = vrot.slane %v2264_v17, %v3751_v6  ;;  %v4148_v10 = vmul.f32 %v3905_v42, %v1379_v11  ;;  %v2162_v14 = vrot.slane %v2108_v22, 1 }
 0x108   : > { %v4140_v47 = vcombine.low %v1831_v50, %v1838_v55  ;;  %v4152_v55 = vcombine.low %v3968_v21, %v1821_v7  ;;  %v1388_v0 = vcombine.high %v1386_v48, %v1386_v48  ;;  %v1406_v50 = vcombine.high %v1210_v13, %v1210_v13 }
 0x109   : > { %v2280_v34 = vcombine.low %v2272_v62, %v2279_v44  ;;  %v5028_v17 = vcombine.low %v3991_v41, %v4010_v60  ;;  %v1423_v36 = vcombine.high %v1211_v19, %v1211_v19  ;;  %v1430_v30 = vrot.slane %v1211_v19, %v3751_v6 }
 0x10a   : > { %5026 = vst [vmem:[#allocation3_spill] sm:$0xff] %v4140_v47  ;;  %v2160_v58 = vrot.slane %v4140_v47, 1  ;;  %5027 = vst [vmem:[#allocation4_spill] sm:$0xff] %v4152_v55  ;;  %v2281_v61 = vcombine.low %v3988_v40, %v4002_v51  ;;  %v1413_v22 = vrot.slane %v1210_v13, %v3751_v6  ;;  %v2159_v21 = vrot.slane %v4152_v55, 1 }
 0x10b   : > { %v2313_v18 = vrot.slane %v5028_v17, %v3751_v6  ;;  %2521 = vrot.lane.b32.xlu1 %v2280_v34, %s3688_s26  ;;  %v1213_v44 = vmax.f32 %v1177_v63, 0.0  ;;  %v2306_v41 = vrot.slane %v2298_v24, %v3751_v6  ;;  %v4168_v7 = vrot.slane %v1942_v20, %v3751_v6  ;;  %v1171_v24 = vpop.f32.mrf.mxu0 }
 0x10c   : > { %v2163_v11 = vsel %vm2158_vm2, %v2160_v58, %v2162_v14  ;;  %v4171_v19 = vmul.f32 %v3893_v35, %v1387_v57  ;;  %v4174_v62 = vmul.f32 %v3911_v49, %v1386_v48  ;;  %v1925_v13 = vcombine.low %v4106_v26, %v4148_v10 }
 0x10d   : > { %2201 = vrot.lane.b32.xlu0 %v2163_v11, %s3689_s28  ;;  %5029 = vst [vmem:[#allocation5_spill] sm:$0xff] %v4168_v7  ;;  %v4179_v14 = vmul.f32 %v3952_v8, %v1388_v0  ;;  %v1420_v34 = vrot.slane %v1406_v50, %v3751_v6  ;;  %v1457_v63 = vcombine.high %v1213_v44, %v1213_v44 }
 0x10e   : > { %v2314_v17 = vcombine.low %v2306_v41, %v2313_v18  ;;  %v4183_v20 = vrot.slane %v1423_v36, %v3751_v6  ;;  %v1438_v11 = vcombine.high %v1430_v30, %v1430_v30  ;;  %v2161_v57 = vsel %vm2158_vm2, %v2159_v21, %v2160_v58  ;;  %v3553_v18 = vpop.f32.mrf.mxu0 }
 0x10f   : > { %v2289_v48 = vrot.slane %v2281_v61, %v3751_v6  ;;  %v4188_v47 = vmul.f32 %v3952_v8, %v1430_v30  ;;  %v1421_v55 = vcombine.high %v1413_v22, %v1413_v22  ;;  %v5030_v0 = vcombine.low %v3940_v2, %v3943_v3 }
 0x110   : > { %2525 = vrot.lane.b32.xlu1 %v2314_v17, %s3688_s26  ;;  %v4199_v58 = vrot.slane %v1925_v13, %v3751_v6  ;;  %v4202_v61 = vmul.f32 %v3887_v29, %v1413_v22  ;;  %v1172_v30 = vadd.f32 %v3871_v12, %v1171_v24  ;;  %v1422_v21 = vcombine.high %v1420_v34, %v1420_v34 }
 0x111   : > { %2199 = vrot.lane.b32.xlu0 %v2161_v57, %s3689_s28  ;;  %v2296_v50 = vrot.slane %v5030_v0, %v3751_v6  ;;  %v1471_v41 = vrot.slane %v1457_v63, %v3751_v6  ;;  %v5031_v57 = vcombine.low %v3943_v3, %v3946_v4  ;;  %v2115_v36 = vrot.slane %v4010_v60, %v3751_v6 }
 0x112   : > { %v1212_v7 = vmax.f32 %v1172_v30, 0.0  ;;  %v5032_v22 = vcombine.low %v3985_v37, %v3988_v40  ;;  %v5033_v24 = vcombine.low %v4002_v51, %v3940_v2  ;;  %v1464_v3 = vrot.slane %v1213_v44, %v3751_v6 }
 0x113   : > { %v2297_v17 = vcombine.low %v2289_v48, %v2296_v50  ;;  %v1865_v0 = vrot.slane %v5031_v57, %v3751_v6  ;;  %v4221_v48 = vmul.f32 %v3905_v42, %v1421_v55  ;;  %v1187_v60 = vadd.f32 %v3553_v18, %v3871_v12  ;;  %v1181_v50 = vpop.f32.mrf.mxu0 }
 0x114   : > { %v1848_v13 = vrot.slane %v5032_v22, %v3751_v6  ;;  %v1855_v63 = vrot.slane %v5033_v24, %v3751_v6  ;;  %v4230_v37 = vmul.f32 %v3883_v27, %v1438_v11  ;;  %v4234_v2 = vmul.f32 %v3900_v39, %v4183_v20 }
 0x115   : > { %2523 = vrot.lane.b32.xlu0 %v2297_v17, %s3688_s26  ;;  %v4226_v4 = vcombine.low %v1865_v0, %v4041_v46  ;;  %v2167_v40 = vrot.slane %v2115_v36, 1  ;;  %v4239_v55 = vmul.f32 %v3893_v35, %v1420_v34  ;;  %v1472_v44 = vcombine.high %v1464_v3, %v1464_v3 }
 0x116   : > { %5035 = vst [vmem:[#allocation7_spill] sm:$0xff] %v4230_v37  ;;  %v4236_v51 = vcombine.low %v1848_v13, %v1855_v63  ;;  %v1473_v30 = vcombine.high %v1471_v41, %v1471_v41  ;;  %v4243_v18 = vmul.f32 %v3911_v49, %v1422_v21  ;;  %v1440_v17 = vcombine.high %v1212_v7, %v1212_v7 }
 0x117   : > { %5034 = vst [vmem:[#allocation6_spill] sm:$0xff] %v4226_v4  ;;  %v2165_v46 = vrot.slane %v4226_v4, 1  ;;  %v1182_v57 = vadd.f32 %v3871_v12, %v1181_v50  ;;  %v1959_v36 = vcombine.low %v4202_v61, %v4221_v48  ;;  %v1447_v0 = vrot.slane %v1212_v7, %v3751_v6 }
 0x118   : > { %5036 = vst [vmem:[#allocation8_spill] sm:$0xff] %v4236_v51  ;;  %v2164_v11 = vrot.slane %v4236_v51, 1  ;;  %v1215_v22 = vmax.f32 %v1187_v60, 0.0  ;;  %v2366_v13 = vcombine.low %v4148_v10, %v4171_v19  ;;  %v1439_v21 = vcombine.high %v4183_v20, %v4183_v20  ;;  %v3556_v20 = vpop.f32.mrf.mxu0 }
 0x119   : > { %v2168_v34 = vsel %vm2158_vm2, %v2165_v46, %v2167_v40  ;;  %v2333_v63 = vcombine.low %v4050_v56, %v4091_v32  ;;  %v4261_v50 = vmul.f32 %v3952_v8, %v1472_v44  ;;  %v4264_v7 = vmul.f32 %v3883_v27, %v1471_v41 }
 0x11a   : > { %2205 = vrot.lane.b32.xlu1 %v2168_v34, %s3689_s28  ;;  %v4267_v60 = vmul.f32 %v3900_v39, %v1473_v30  ;;  %v2166_v10 = vsel %vm2158_vm2, %v2164_v11, %v2165_v46  ;;  %v4273_v40 = vmul.f32 %v3911_v49, %v1464_v3  ;;  %v1454_v34 = vrot.slane %v1440_v17, %v3751_v6 }
 0x11b   : > { %5037 = vst [vmem:[#allocation9_spill] sm:$0xff] %v4264_v7  ;;  %2203 = vrot.lane.b32.xlu0 %v2166_v10, %s3689_s28  ;;  %v1214_v56 = vmax.f32 %v1182_v57, 0.0  ;;  %v4280_v44 = vrot.slane %v1959_v36, %v3751_v6  ;;  %v1455_v30 = vcombine.high %v1447_v0, %v1447_v0  ;;  %v1498_v46 = vrot.slane %v1215_v22, %v3751_v6  ;;  %v1191_v7 = vpop.f32.mrf.mxu0 }
 0x11c   : > { %v4284_v11 = vmul.f32 %v3896_v38, %v1439_v21  ;;  %v4287_v3 = vmul.f32 %v3918_v52, %v1447_v0  ;;  %v5038_v17 = vcombine.low %v4028_v25, %v4047_v53  ;;  %v2347_v10 = vrot.slane %v2333_v63, %v3751_v6 }
 0x11d   : > { %v1491_v41 = vcombine.high %v1215_v22, %v1215_v22  ;;  %v2315_v21 = vcombine.low %v4038_v43, %v3996_v45  ;;  %v1456_v0 = vcombine.high %v1454_v34, %v1454_v34  ;;  %v1474_v51 = vcombine.high %v1214_v56, %v1214_v56 }
 0x11e   : > { %v2340_v57 = vrot.slane %v5038_v17, %v3751_v6  ;;  %v2316_v53 = vcombine.low %v4005_v54, %v4021_v15  ;;  %v4303_v17 = vmul.f32 %v3887_v29, %v1455_v30  ;;  %v4306_v63 = vmul.f32 %v3905_v42, %v1454_v34 }
 0x11f   : > { %v1506_v36 = vcombine.high %v1498_v46, %v1498_v46  ;;  %v2323_v24 = vrot.slane %v2315_v21, %v3751_v6  ;;  %v1977_v22 = vcombine.low %v4284_v11, %v4287_v3  ;;  %v5039_v54 = vcombine.low %v4021_v15, %v4028_v25 }
 0x120   : > { %v2348_v4 = vcombine.low %v2340_v57, %v2347_v10  ;;  %v2330_v45 = vrot.slane %v2316_v53, %v3751_v6  ;;  %v2122_v30 = vrot.slane %v4091_v32, %v3751_v6  ;;  %v4320_v34 = vrot.slane %v1491_v41, %v3751_v6 }
 0x121   : > { %v1899_v57 = vrot.slane %v5039_v54, %v3751_v6  ;;  %v1481_v10 = vrot.slane %v1214_v56, %v3751_v6  ;;  %v2350_v21 = vcombine.low %v4059_v5, %v4106_v26  ;;  %v1197_v32 = vadd.f32 %v3556_v20, %v3871_v12 }
 0x122   : > { %2529 = vrot.lane.b32.xlu1 %v2348_v4, %s3688_s26  ;;  %v5040_v4 = vcombine.low %v4053_v9, %v4056_v59  ;;  %v2331_v37 = vcombine.low %v2323_v24, %v2330_v45  ;;  %v2172_v25 = vrot.slane %v2122_v30, 1  ;;  %v4334_v41 = vmul.f32 %v3893_v35, %v1498_v46 }
 0x123   : > { %v4330_v15 = vcombine.low %v1899_v57, %v4114_v16  ;;  %v4337_v56 = vmul.f32 %v3911_v49, %v1506_v36  ;;  %v2364_v26 = vrot.slane %v2350_v21, %v3751_v6  ;;  %v2367_v54 = vcombine.low %v4174_v62, %v4179_v14 }
 0x124   : > { %v2357_v53 = vrot.slane %v5040_v4, %v3751_v6  ;;  %v1488_v4 = vrot.slane %v1474_v51, %v3751_v6  ;;  %2527 = vrot.lane.b32.xlu0 %v2331_v37, %s3688_s26  ;;  %v5042_v24 = vcombine.low %v4031_v28, %v4038_v43  ;;  %v1192_v46 = vadd.f32 %v3871_v12, %v1191_v7 }
 0x125   : > { %5041 = vst [vmem:[#allocation10_spill] sm:$0xff] %v4330_v15  ;;  %v2170_v16 = vrot.slane %v4330_v15, 1  ;;  %v4351_v36 = vmul.f32 %v3893_v35, %v1456_v0  ;;  %v1489_v45 = vcombine.high %v1481_v10, %v1481_v10  ;;  %v2374_v57 = vrot.slane %v2366_v13, %v3751_v6 }
 0x126   : > { %v1882_v20 = vrot.slane %v5042_v24, %v3751_v6  ;;  %v2381_v30 = vrot.slane %v2367_v54, %v3751_v6  ;;  %v2365_v37 = vcombine.low %v2357_v53, %v2364_v26  ;;  %v1217_v21 = vmax.f32 %v1197_v32, 0.0 }
 0x127   : > { %v2173_v51 = vsel %vm2158_vm2, %v2170_v16, %v2172_v25  ;;  %v4360_v28 = vrot.slane %v1977_v22, %v3751_v6  ;;  %v1993_v12 = vcombine.low %v4303_v17, %v4306_v63  ;;  %v2418_v43 = vcombine.low %v4287_v3, %v4303_v17 }
 0x128   : > { %v4357_v15 = vcombine.low %v1882_v20, %v4066_v1  ;;  %v1507_v13 = vcombine.high %v4320_v34, %v4320_v34  ;;  %2209 = vrot.lane.b32.xlu1 %v2173_v51, %s3689_s28  ;;  %v2028_v7 = vcombine.low %v4334_v41, %v4337_v56  ;;  %v1490_v0 = vcombine.high %v1488_v4, %v1488_v4 }
 0x129   : > { %2531 = vrot.lane.b32.xlu0 %v2365_v37, %s3688_s26  ;;  %v1216_v1 = vmax.f32 %v1192_v46, 0.0  ;;  %v5043_v22 = vcombine.low %v4171_v19, %v4174_v62  ;;  %v4378_v25 = vmul.f32 %v3952_v8, %v4320_v34  ;;  %v2382_v32 = vcombine.low %v2374_v57, %v2381_v30 }
 0x12a   : > { %v2169_v26 = vrot.slane %v4357_v15, 1  ;;  %v2129_v54 = vrot.slane %v4179_v14, %v3751_v6  ;;  %v1994_v24 = vcombine.low %v4351_v36, %v4273_v40  ;;  %v4386_v20 = vmul.f32 %v3896_v38, %v1481_v10 }
 0x12b   : > { %v1940_v53 = vrot.slane %v5043_v22, %v3751_v6  ;;  %v4389_v46 = vmul.f32 %v3918_v52, %v1489_v45  ;;  %v4392_v19 = vrot.slane %v1217_v21, %v3751_v6  ;;  %v4395_v62 = vmul.f32 %v3887_v29, %v1488_v4 }
 0x12c   : > { %2533 = vrot.lane.b32.xlu1 %v2382_v32, %s3688_s26  ;;  %v2171_v34 = vsel %vm2158_vm2, %v2169_v26, %v2170_v16  ;;  %v2177_v57 = vrot.slane %v2129_v54, 1  ;;  %v4403_v10 = vrot.slane %v2028_v7, %v3751_v6  ;;  %v4406_v45 = vmul.f32 %v3905_v42, %v1490_v0  ;;  %v5044_v16 = vld [vmem:[#allocation2_spill] sm:$0xff] }
 0x12d   : > { %v4400_v14 = vcombine.low %v4199_v58, %v1940_v53  ;;  %2207 = vrot.lane.b32.xlu0 %v2171_v34, %s3689_s28  ;;  %v1508_v4 = vcombine.high %v1216_v1, %v1216_v1  ;;  %v2383_v37 = vcombine.low %v5044_v16, %v4097_v23  ;;  %v5045_v58 = vcombine.low %v4100_v31, %v4202_v61 }
 0x12e   : > { %v2400_v0 = vcombine.low %v4221_v48, %v4239_v55  ;;  %v2011_v22 = vcombine.low %v4386_v20, %v4389_v46  ;;  %v1525_v53 = vcombine.high %v1217_v21, %v1217_v21  ;;  %v1540_v32 = vcombine.high %v4392_v19, %v4392_v19 }
 0x12f   : > { %v2175_v51 = vrot.slane %v4400_v14, 1  ;;  %v2398_v7 = vrot.slane %v5045_v58, %v3751_v6  ;;  %v1515_v26 = vrot.slane %v1216_v1, %v3751_v6  ;;  %v2391_v34 = vrot.slane %v2383_v37, %v3751_v6 }
 0x130   : > { %v2401_v61 = vcombine.low %v4243_v18, %v4188_v47  ;;  %v2408_v16 = vrot.slane %v2400_v0, %v3751_v6  ;;  %v1522_v48 = vrot.slane %v1508_v4, %v3751_v6  ;;  %v5046_v21 = vcombine.low %v4081_v33, %v4053_v9 }
 0x131   : > { %v2178_v54 = vsel %vm2158_vm2, %v2175_v51, %v2177_v57  ;;  %v5047_v1 = vcombine.low %v4056_v59, %v4059_v5  ;;  %v5048_v37 = vcombine.low %v4239_v55, %v4243_v18  ;;  %v2399_v0 = vcombine.low %v2391_v34, %v2398_v7 }
 0x132   : > { %2213 = vrot.lane.b32.xlu1 %v2178_v54, %s3689_s28  ;;  %v1916_v58 = vrot.slane %v5046_v21, %v3751_v6  ;;  %v2415_v4 = vrot.slane %v2401_v61, %v3751_v6  ;;  %v2136_v54 = vrot.slane %v4188_v47, %v3751_v6  ;;  %v2417_v9 = vcombine.low %v4234_v2, %v4284_v11  ;;  %v5050_v61 = vld [vmem:[#allocation5_spill] sm:$0xff] }
 0x133   : > { %v1923_v57 = vrot.slane %v5047_v1, %v3751_v6  ;;  %v1974_v30 = vrot.slane %v5048_v37, %v3751_v6  ;;  %v2027_v33 = vcombine.low %v4395_v62, %v4406_v45  ;;  %v1733_v59 = vmul.f32 %v3883_v27, %v1507_v13  ;;  %2535 = vrot.lane.b32.xlu0 %v2399_v0, %s3688_s26 }
 0x134   : > { %v4458_v55 = vrot.slane %v1525_v53, %v3751_v6  ;;  %v4461_v18 = vmul.f32 %v3893_v35, %v1540_v32  ;;  %v2416_v47 = vcombine.low %v2408_v16, %v2415_v4  ;;  %v2434_v11 = vcombine.low %v4306_v63, %v4351_v36 }
 0x135   : > { %v4452_v5 = vcombine.low %v1916_v58, %v1923_v57  ;;  %v4455_v21 = vcombine.low %v4280_v44, %v1974_v30  ;;  %v1523_v7 = vcombine.high %v1515_v26, %v1515_v26  ;;  %v2182_v13 = vrot.slane %v2136_v54, 1 }
 0x136   : > { %v5049_v44 = vcombine.low %v4097_v23, %v4100_v31  ;;  %v1524_v53 = vcombine.high %v1522_v48, %v1522_v48  ;;  %2537 = vrot.lane.b32.xlu1 %v2416_v47, %s3688_s26  ;;  %v2425_v32 = vrot.slane %v2417_v9, %v3751_v6  ;;  %v2432_v36 = vrot.slane %v2418_v43, %v3751_v6  ;;  %v5055_v47 = vld [vmem:[#allocation9_spill] sm:$0xff] }
 0x137   : > { %v2174_v27 = vrot.slane %v4452_v5, 1  ;;  %v2180_v35 = vrot.slane %v4455_v21, 1  ;;  %v2001_v23 = vrot.slane %v1993_v12, %v3751_v6  ;;  %v2008_v31 = vrot.slane %v1994_v24, %v3751_v6 }
 0x138   : > { %v1957_v30 = vrot.slane %v5049_v44, %v3751_v6  ;;  %v4489_v58 = vmul.f32 %v3911_v49, %v4458_v55  ;;  %v4492_v1 = vmul.f32 %v3900_v39, %v1515_v26  ;;  %v2442_v3 = vrot.slane %v2434_v11, %v3751_v6  ;;  %v5052_v26 = vld [vmem:[#allocation7_spill] sm:$0xff] }
 0x139   : > { %v2176_v34 = vsel %vm2158_vm2, %v2174_v27, %v2175_v51  ;;  %v5051_v43 = vcombine.low %v4273_v40, %v4261_v50  ;;  %v4501_v17 = vmul.f32 %v3896_v38, %v1523_v7  ;;  %v4504_v63 = vmul.f32 %v3918_v52, %v1522_v48 }
 0x13a   : > { %v4480_v16 = vcombine.low %v5050_v61, %v1957_v30  ;;  %2211 = vrot.lane.b32.xlu0 %v2176_v34, %s3689_s28  ;;  %v2183_v49 = vsel %vm2158_vm2, %v2180_v35, %v2182_v13  ;;  %v2143_v39 = vrot.slane %v4261_v50, %v3751_v6  ;;  %v2025_v12 = vrot.slane %v2011_v22, %v3751_v6 }
 0x13b   : > { %v2449_v51 = vrot.slane %v5051_v43, %v3751_v6  ;;  %2217 = vrot.lane.b32.xlu1 %v2183_v49, %s3689_s28  ;;  %v2433_v24 = vcombine.low %v2425_v32, %v2432_v36  ;;  %v2452_v40 = vcombine.low %v4389_v46, %v4395_v62  ;;  %v5053_v38 = vcombine.low %v5052_v26, %v4234_v2 }
 0x13c   : > { %v1738_v52 = vmul.f32 %v3905_v42, %v4392_v19  ;;  %v4520_v48 = vmul.f32 %v3887_v29, %v1524_v53  ;;  %v2179_v50 = vrot.slane %v4480_v16, 1  ;;  %v4523_v22 = vcombine.low %v2001_v23, %v2008_v31 }
 0x13d   : > { %v1984_v57 = vrot.slane %v5053_v38, %v3751_v6  ;;  %v1541_v37 = vcombine.high %v4458_v55, %v4458_v55  ;;  %v2450_v46 = vcombine.low %v2442_v3, %v2449_v51  ;;  %v2468_v2 = vcombine.low %v4406_v45, %v4334_v41 }
 0x13e   : > { %2539 = vrot.lane.b32.xlu0 %v2433_v24, %s3688_s26  ;;  %v2469_v62 = vcombine.low %v4337_v56, %v4378_v25  ;;  %v2062_v29 = vcombine.low %v4461_v18, %v4489_v58  ;;  %v2044_v42 = vcombine.low %v1733_v59, %v4492_v1  ;;  %v2045_v19 = vcombine.low %v4501_v17, %v4504_v63 }
 0x13f   : > { %v2187_v0 = vrot.slane %v2143_v39, 1  ;;  %2541 = vrot.lane.b32.xlu1 %v2450_v46, %s3688_s26  ;;  %v5054_v4 = vcombine.low %v4267_v60, %v4386_v20  ;;  %v2466_v41 = vrot.slane %v2452_v40, %v3751_v6  ;;  %v4544_v56 = vcombine.low %v1984_v57, %v4360_v28 }
 0x140   : > { %v2035_v45 = vrot.slane %v2027_v33, %v3751_v6  ;;  %v2061_v9 = vcombine.low %v4520_v48, %v1738_v52  ;;  %v2181_v59 = vsel %vm2158_vm2, %v2179_v50, %v2180_v35  ;;  %v2185_v55 = vrot.slane %v4523_v22, 1 }
 0x141   : > { %v2459_v54 = vrot.slane %v5054_v4, %v3751_v6  ;;  %v5056_v11 = vcombine.low %v5055_v47, %v4267_v60  ;;  %v2476_v20 = vrot.slane %v2468_v2, %v3751_v6  ;;  %v2483_v28 = vrot.slane %v2469_v62, %v3751_v6  ;;  %v4609_v62 = vld [vmem:[%s3756_s13] sm:$0xff] }
 0x142   : > { %2215 = vrot.lane.b32.xlu0 %v2181_v59, %s3689_s28  ;;  %v2052_v27 = vrot.slane %v2044_v42, %v3751_v6  ;;  %v2188_v33 = vsel %vm2158_vm2, %v2185_v55, %v2187_v0  ;;  %v2150_v13 = vrot.slane %v4378_v25, %v3751_v6  ;;  %v2184_v30 = vrot.slane %v4544_v56, 1  ;;  %v3651_v59 = vld [vmem:[%s3756_s13 + $0x28] sm:$0x3] }
 0x143   : > { %v2018_v7 = vrot.slane %v5056_v11, %v3751_v6  ;;  %2221 = vrot.lane.b32.xlu1 %v2188_v33, %s3689_s28  ;;  %v2467_v44 = vcombine.low %v2459_v54, %v2466_v41  ;;  %v4564_v60 = vcombine.low %v2035_v45, %v4403_v10  ;;  %v1741_v53 = vmul.f32 %v3952_v8, %v1541_v37  ;;  %v3648_v37 = vld [vmem:[%s3756_s13 + $0x10] sm:$0x3]  ;;  %v4621_v45 = vld [vmem:[%s3756_s13 + $0x20] sm:$0xff]  ;;  %v4628_v11 = vld [vmem:[%s3756_s13 + $0x18] sm:$0xff] }
 0x144   : > { %v2069_v32 = vrot.slane %v2061_v9, %v3751_v6  ;;  %v2076_v36 = vrot.slane %v2062_v29, %v3751_v6  ;;  %v2059_v34 = vrot.slane %v2045_v19, %v3751_v6  ;;  %v2484_v25 = vcombine.low %v2476_v20, %v2483_v28 }
 0x145   : > { %v4567_v35 = vcombine.low %v2018_v7, %v2025_v12  ;;  %v2192_v61 = vrot.slane %v2150_v13, 1  ;;  %v2157_v23 = vrot.slane %v1741_v53, %v3751_v6  ;;  %v2190_v10 = vrot.slane %v4564_v60, 1 }
 0x146   : > { %2543 = vrot.lane.b32.xlu0 %v2467_v44, %s3688_s26  ;;  %v2186_v8 = vsel %vm2158_vm2, %v2184_v30, %v2185_v55  ;;  %v4578_v3 = vcombine.low %v2069_v32, %v2076_v36  ;;  %v4580_v43 = vcombine.low %v2052_v27, %v2059_v34  ;;  %v2502_v51 = vcombine.low %v1738_v52, %v4461_v18  ;;  %v4640_v30 = vld [vmem:[%s3756_s13 + $0x38] sm:$0xff]  ;;  %v3654_v32 = vld [vmem:[%s3756_s13 + $0x40] sm:$0x3] }
 0x147   : > { %2545 = vrot.lane.b32.xlu1 %v2484_v25, %s3688_s26  ;;  %v2189_v31 = vrot.slane %v4567_v35, 1  ;;  %v2503_v49 = vcombine.low %v4489_v58, %v1741_v53  ;;  %v2193_v39 = vsel %vm2158_vm2, %v2190_v10, %v2192_v61  ;;  %v2197_v12 = vrot.slane %v2157_v23, 1  ;;  %v4647_v25 = vld [vmem:[%s3756_s13 + $0x30] sm:$0xff] }
 0x148   : > { %v2485_v24 = vcombine.low %v4492_v1, %v4501_v17  ;;  %v2486_v40 = vcombine.low %v4504_v63, %v4520_v48  ;;  %v2195_v18 = vrot.slane %v4578_v3, 1  ;;  %v2194_v58 = vrot.slane %v4580_v43, 1  ;;  %v4603_v48 = vld [vmem:[%s3756_s13 + $0x8] sm:$0xff] }
 0x149   : > { %v2191_v26 = vsel %vm2158_vm2, %v2189_v31, %v2190_v10  ;;  %v2510_v38 = vrot.slane %v2502_v51, %v3751_v6  ;;  %v2517_v57 = vrot.slane %v2503_v49, %v3751_v6  ;;  %v2823_v50 = vrot.slane %v4603_v48, 1 }
 0x14a   : > { %2219 = vrot.lane.b32.xlu0 %v2186_v8, %s3689_s28  ;;  %v2198_v1 = vsel %vm2158_vm2, %v2195_v18, %v2197_v12  ;;  %v2493_v17 = vrot.slane %v2485_v24, %v3751_v6  ;;  %v2500_v63 = vrot.slane %v2486_v40, %v3751_v6  ;;  %v2196_v52 = vsel %vm2158_vm2, %v2194_v58, %v2195_v18  ;;  %v3657_v24 = vld [vmem:[%s3756_s13 + $0x58] sm:$0x3]  ;;  %v4666_v18 = vld [vmem:[%s3756_s13 + $0x48] sm:$0xff] }
 0x14b   : > { %2225 = vrot.lane.b32.xlu1 %v2193_v39, %s3689_s28  ;;  %v2825_v46 = vrot.slane %v3648_v37, 1  ;;  %v2518_v2 = vcombine.low %v2510_v38, %v2517_v57  ;;  %v2822_v29 = vrot.slane %v4609_v62, 1  ;;  %v2912_v19 = vrot.slane %v4603_v48, 2  ;;  %v4659_v39 = vld [vmem:[%s3756_s13 + $0x50] sm:$0xff] }
 0x14c   : > { %v2501_v6 = vcombine.low %v2493_v17, %v2500_v63  ;;  %v2914_v0 = vrot.slane %v3648_v37, 2  ;;  %v2911_v54 = vrot.slane %v4609_v62, 2  ;;  %v2828_v9 = vrot.slane %v4621_v45, 1 }
 0x14d   : > { %v2826_v42 = vsel %vm2158_vm2, %v2823_v50, %v2825_v46  ;;  %v2824_v4 = vsel %vm2158_vm2, %v2822_v29, %v2823_v50  ;;  %v2830_v55 = vrot.slane %v3651_v59, 1  ;;  %v2827_v7 = vrot.slane %v4628_v11, 1  ;;  %v4678_v50 = vld [vmem:[%s3756_s13 + $0x68] sm:$0xff]  ;;  %v3660_v46 = vld [vmem:[%s3756_s13 + $0x70] sm:$0x3] }
 0x14e   : > { %2223 = vrot.lane.b32.xlu0 %v2191_v26, %s3689_s28  ;;  %v2915_v41 = vsel %vm2910_vm3, %v2912_v19, %v2914_v0  ;;  %v2913_v47 = vsel %vm2910_vm3, %v2911_v54, %v2912_v19  ;;  %v2917_v28 = vrot.slane %v4621_v45, 2  ;;  %v2919_v27 = vrot.slane %v3651_v59, 2  ;;  %v4697_v59 = vld [vmem:[%s3756_s13 + $0x80] sm:$0xff] }
 0x14f   : > { %2229 = vrot.lane.b32.xlu1 %v2198_v1, %s3689_s28  ;;  %v2831_v20 = vsel %vm2158_vm2, %v2828_v9, %v2830_v55  ;;  %v2829_v33 = vsel %vm2158_vm2, %v2827_v7, %v2828_v9  ;;  %v2916_v13 = vrot.slane %v4628_v11, 2  ;;  %v2833_v53 = vrot.slane %v4640_v30, 1 }
 0x150   : > { %v2920_v44 = vsel %vm2910_vm3, %v2917_v28, %v2919_v27  ;;  %v2835_v36 = vrot.slane %v3654_v32, 1  ;;  %v2832_v61 = vrot.slane %v4647_v25, 1  ;;  %v2922_v10 = vrot.slane %v4640_v30, 2  ;;  %v4704_v27 = vld [vmem:[%s3756_s13 + $0x78] sm:$0xff] }
 0x151   : > { %v2918_v34 = vsel %vm2910_vm3, %v2916_v13, %v2917_v28  ;;  %v2924_v8 = vrot.slane %v3654_v32, 2  ;;  %v2921_v51 = vrot.slane %v4647_v25, 2  ;;  %v2838_v12 = vrot.slane %v4659_v39, 1 }
 0x152   : > { %2227 = vrot.lane.b32.xlu0 %v2196_v52, %s3689_s28  ;;  %v2836_v23 = vsel %vm2158_vm2, %v2833_v53, %v2835_v36  ;;  %v2834_v31 = vsel %vm2158_vm2, %v2832_v61, %v2833_v53  ;;  %v2840_v40 = vrot.slane %v3657_v24, 1  ;;  %v2837_v58 = vrot.slane %v4666_v18, 1 }
 0x153   : > { %2549 = vrot.lane.b32.xlu1 %v2518_v2, %s3688_s26  ;;  %v2925_v49 = vsel %vm2910_vm3, %v2922_v10, %v2924_v8  ;;  %v2923_v26 = vsel %vm2910_vm3, %v2921_v51, %v2922_v10  ;;  %v2927_v57 = vrot.slane %v4659_v39, 2  ;;  %v2929_v1 = vrot.slane %v3657_v24, 2  ;;  %v4716_v10 = vld [vmem:[%s3756_s13 + $0x98] sm:$0xff] }
 0x154   : > { %v2841_v38 = vsel %vm2158_vm2, %v2838_v12, %v2840_v40  ;;  %v2839_v17 = vsel %vm2158_vm2, %v2837_v58, %v2838_v12  ;;  %v2926_v63 = vrot.slane %v4666_v18, 2  ;;  %v2843_v37 = vrot.slane %v4678_v50, 1  ;;  %v4723_v12 = vld [vmem:[%s3756_s13 + $0x90] sm:$0xff] }
 0x155   : > { %v2930_v52 = vsel %vm2910_vm3, %v2927_v57, %v2929_v1  ;;  %v2845_v2 = vrot.slane %v3660_v46, 1  ;;  %v2932_v0 = vrot.slane %v4678_v50, 2  ;;  %v2848_v55 = vrot.slane %v4697_v59, 1 }
 0x156   : > { %2547 = vrot.lane.b32.xlu0 %v2501_v6, %s3688_s26  ;;  %v2928_v29 = vsel %vm2910_vm3, %v2926_v63, %v2927_v57  ;;  %v4685_v6 = vld [vmem:[%s3756_s13 + $0x60] sm:$0xff]  ;;  %v2936_v36 = vrot.slane %v4704_v27, 2  ;;  %v2853_v8 = vrot.slane %v4716_v10, 1  ;;  %v2852_v24 = vrot.slane %v4723_v12, 1 }
 0x157   : > { %2864 = vrot.lane.b32.xlu1 %v2826_v42, %s3689_s28  ;;  %v2842_v42 = vrot.slane %v4685_v6, 1  ;;  %v2846_v19 = vsel %vm2158_vm2, %v2843_v37, %v2845_v2  ;;  %v2942_v57 = vrot.slane %v4716_v10, 2 }
 0x158   : > { %v2854_v2 = vsel %vm2158_vm2, %v2852_v24, %v2853_v8 }
 0x159   : > { %v2844_v54 = vsel %vm2158_vm2, %v2842_v42, %v2843_v37 }
 0x15a   : > { %2862 = vrot.lane.b32.xlu0 %v2824_v4, %s3689_s28  ;;  %v2934_v4 = vrot.slane %v3660_v46, 2 }
 0x15b   : > { %2953 = vrot.lane.b32.xlu1 %v2915_v41, %s3688_s26  ;;  %v2931_v41 = vrot.slane %v4685_v6, 2 }
 0x15c   : > { %v2935_v9 = vsel %vm2910_vm3, %v2932_v0, %v2934_v4 }
 0x15d   : > { %v2933_v28 = vsel %vm2910_vm3, %v2931_v41, %v2932_v0  ;;  %v4743_v0 = vld [vmem:[%s3756_s13 + $0xb0] sm:$0xff] }
 0x15e   : > { %2951 = vrot.lane.b32.xlu0 %v2913_v47, %s3688_s26  ;;  %v3663_v47 = vld [vmem:[%s3756_s13 + $0x88] sm:$0x3]  ;;  %v2858_v4 = vrot.slane %v4743_v0, 1 }
 0x15f   : > { %2868 = vrot.lane.b32.xlu1 %v2831_v20, %s3689_s28  ;;  %v2850_v7 = vrot.slane %v3663_v47, 1  ;;  %v2939_v53 = vrot.slane %v3663_v47, 2 }
 0x161   : > { %v2851_v13 = vsel %vm2158_vm2, %v2848_v55, %v2850_v7 }
 0x162   : > { %2866 = vrot.lane.b32.xlu0 %v2829_v33, %s3689_s28  ;;  %v2847_v33 = vrot.slane %v4704_v27, 1 }
 0x163   : > { %2957 = vrot.lane.b32.xlu1 %v2920_v44, %s3688_s26  ;;  %v2937_v44 = vrot.slane %v4697_v59, 2 }
 0x164   : > { %v2849_v32 = vsel %vm2158_vm2, %v2847_v33, %v2848_v55  ;;  %v4750_v55 = vld [vmem:[%s3756_s13 + $0xa8] sm:$0xff] }
 0x165   : > { %v2857_v47 = vrot.slane %v4750_v55, 1 }
 0x166   : > { %2955 = vrot.lane.b32.xlu0 %v2918_v34, %s3688_s26 }
 0x167   : > { %2872 = vrot.lane.b32.xlu1 %v2836_v23, %s3689_s28  ;;  %v2940_v23 = vsel %vm2910_vm3, %v2937_v44, %v2939_v53 }
 0x16a   : > { %2870 = vrot.lane.b32.xlu0 %v2834_v31, %s3689_s28  ;;  %v3666_v31 = vld [vmem:[%s3756_s13 + $0xa0] sm:$0x3] }
 0x16b   : > { %2961 = vrot.lane.b32.xlu1 %v2925_v49, %s3688_s26  ;;  %v2855_v51 = vrot.slane %v3666_v31, 1  ;;  %v2938_v49 = vsel %vm2910_vm3, %v2936_v36, %v2937_v44  ;;  %v2944_v1 = vrot.slane %v3666_v31, 2  ;;  %v2946_v36 = vrot.slane %v4750_v55, 2 }
 0x16e   : > { %2959 = vrot.lane.b32.xlu0 %v2923_v26, %s3688_s26  ;;  %v5057_v26 = vld [vmem:[#allocation4_spill] sm:$0xff] }
 0x16f   : > { %2876 = vrot.lane.b32.xlu1 %v2841_v38, %s3689_s28  ;;  %v2856_v38 = vsel %vm2158_vm2, %v2853_v8, %v2855_v51 }
 0x172   : > { %2874 = vrot.lane.b32.xlu0 %v2839_v17, %s3689_s28  ;;  %v5058_v17 = vld [vmem:[#allocation3_spill] sm:$0xff] }
 0x173   : > { %2965 = vrot.lane.b32.xlu1 %v2930_v52, %s3688_s26 }
 0x176   : > { %2963 = vrot.lane.b32.xlu0 %v2928_v29, %s3688_s26  ;;  %v2941_v29 = vrot.slane %v4723_v12, 2 }
 0x177   : > { %2880 = vrot.lane.b32.xlu1 %v2846_v19, %s3689_s28  ;;  %v2945_v19 = vsel %vm2910_vm3, %v2942_v57, %v2944_v1 }
 0x178   : > { %v2520_v20 = vpop.permute.xlu1 %2519 }
 0x17a   : > { %2878 = vrot.lane.b32.xlu0 %v2844_v54, %s3689_s28  ;;  %v3669_v54 = vld [vmem:[%s3756_s13 + $0xb8] sm:$0x3] }
 0x17b   : > { %2969 = vrot.lane.b32.xlu1 %v2935_v9, %s3688_s26  ;;  %v2860_v41 = vrot.slane %v3669_v54, 1  ;;  %v2943_v9 = vsel %vm2910_vm3, %v2941_v29, %v2942_v57  ;;  %v2949_v33 = vrot.slane %v3669_v54, 2 }
 0x17d   : > { %v2522_v61 = vpop.permute.xlu1 %2521 }
 0x17e   : > { %2967 = vrot.lane.b32.xlu0 %v2933_v28, %s3688_s26  ;;  %v2947_v28 = vrot.slane %v4743_v0, 2 }
 0x17f   : > { %v2202_v34 = vpop.permute.xlu0 %2201  ;;  %2884 = vrot.lane.b32.xlu1 %v2851_v13, %s3689_s28  ;;  %v5059_v13 = vld [vmem:[#allocation6_spill] sm:$0xff] }
 0x180   : > { %v2568_v63 = vsel %vm1004_vm1, %v5058_v17, %v2202_v34  ;;  %v5060_v34 = vld [vmem:[#allocation8_spill] sm:$0xff]  ;;  %v2950_v8 = vsel %vm2910_vm3, %v2947_v28, %v2949_v33  ;;  %v2948_v51 = vsel %vm2910_vm3, %v2946_v36, %v2947_v28 }
 0x181   : > { %v2585_v37 = vsel %vm2583_vm4, %v2568_v63, %v2522_v61 }
 0x182   : > { %2882 = vrot.lane.b32.xlu0 %v2849_v32, %s3689_s28  ;;  %v2526_v46 = vpop.permute.xlu1 %2525  ;;  %v2859_v32 = vsel %vm2158_vm2, %v2857_v47, %v2858_v4 }
 0x183   : > { %v2200_v40 = vpop.permute.xlu0 %2199  ;;  %2973 = vrot.lane.b32.xlu1 %v2940_v23, %s3688_s26 }
 0x184   : > { %v2567_v58 = vsel %vm1004_vm1, %v5057_v26, %v2200_v40 }
 0x185   : > { %v2584_v52 = vsel %vm2583_vm4, %v2567_v58, %v2520_v20  ;;  %v2861_v20 = vsel %vm2158_vm2, %v2858_v4, %v2860_v41 }
 0x186   : > { %2971 = vrot.lane.b32.xlu0 %v2938_v49, %s3688_s26  ;;  %3561 = vmatprep.mubr.msk.f32.mxu0 %vm2609_vm5, %v2584_v52 }
 0x187   : > { %3562 = vmatmul.mubr.msk.f32.vlgmr.msra.gmra.mxu0 %vm2609_vm5, %v2585_v37  ;;  %2888 = vrot.lane.b32.xlu1 %v2856_v38, %s3689_s28  ;;  %v2524_v42 = vpop.permute.xlu0 %2523  ;;  %v5061_v38 = vld [vmem:[#allocation10_spill] sm:$0xff] }
 0x18a   : > { %2886 = vrot.lane.b32.xlu0 %v2854_v2, %s3689_s28 }
 0x18b   : > { %2977 = vrot.lane.b32.xlu1 %v2945_v19, %s3688_s26 }
 0x18c   : > { %v2206_v7 = vpop.permute.xlu1 %2205 }
 0x18d   : > { %v2570_v44 = vsel %vm1004_vm1, %v5059_v13, %v2206_v7  ;;  %v2204_v53 = vpop.permute.xlu0 %2203 }
 0x18e   : > { %2975 = vrot.lane.b32.xlu0 %v2943_v9, %s3688_s26  ;;  %v2569_v61 = vsel %vm1004_vm1, %v5060_v34, %v2204_v53  ;;  %v2587_v31 = vsel %vm2583_vm4, %v2570_v44, %v2526_v46 }
 0x18f   : > { %2892 = vrot.lane.b32.xlu1 %v2861_v20, %s3689_s28  ;;  %v2586_v23 = vsel %vm2583_vm4, %v2569_v61, %v2524_v42 }
 0x190   : > { %3564 = vmatprep.mubr.msk.f32.mxu0 %vm2609_vm5, %v2586_v23 }
 0x191   : > { %3565 = vmatmul.mubr.msk.f32.gmra.mxu0 %vm2609_vm5, %v2587_v31 }
 0x192   : > { %2890 = vrot.lane.b32.xlu0 %v2859_v32, %s3689_s28 }
 0x193   : > { %2981 = vrot.lane.b32.xlu1 %v2950_v8, %s3688_s26 }
 0x194   : > { %v2530_v49 = vpop.permute.xlu1 %2529 }
 0x196   : > { %2979 = vrot.lane.b32.xlu0 %v2948_v51, %s3688_s26  ;;  %v2528_v24 = vpop.permute.xlu0 %2527 }
 0x19a   : > { %v2210_v40 = vpop.permute.xlu1 %2209 }
 0x19b   : > { %v2532_v26 = vpop.permute.xlu0 %2531  ;;  %v2572_v57 = vsel %vm1004_vm1, %v5061_v38, %v2210_v40 }
 0x19c   : > { %v2589_v52 = vsel %vm2583_vm4, %v2572_v57, %v2530_v49 }
 0x19e   : > { %v2534_v58 = vpop.permute.xlu1 %2533 }
 0x19f   : > { %v2208_v1 = vpop.permute.xlu0 %2207 }
 0x1a0   : > { %v2571_v17 = vsel %vm1004_vm1, %v4357_v15, %v2208_v1 }
 0x1a1   : > { %v2588_v63 = vsel %vm2583_vm4, %v2571_v17, %v2528_v24  ;;  %v3111_v17 = vld [vmem:[%s5010_s4] sm:$0xff] }
 0x1a2   : > { %3567 = vmatprep.mubr.msk.f32.mxu0 %vm2609_vm5, %v2588_v63 }
 0x1a3   : > { %3568 = vmatmul.mubr.msk.f32.gmra.mxu0 %vm2609_vm5, %v2589_v52 }
 0x1a4   : > { %v2214_v37 = vpop.permute.xlu1 %2213 }
 0x1a5   : > { %v2536_v46 = vpop.permute.xlu0 %2535  ;;  %v2574_v29 = vsel %vm1004_vm1, %v4400_v14, %v2214_v37 }
 0x1a6   : > { %v2591_v54 = vsel %vm2583_vm4, %v2574_v29, %v2534_v58 }
 0x1a8   : > { %v2538_v2 = vpop.permute.xlu1 %2537 }
 0x1ac   : > { %v2212_v42 = vpop.permute.xlu0 %2211 }
 0x1ad   : > { %v2573_v19 = vsel %vm1004_vm1, %v4452_v5, %v2212_v42  ;;  %v2218_v4 = vpop.permute.xlu1 %2217 }
 0x1ae   : > { %v2590_v15 = vsel %vm2583_vm4, %v2573_v19, %v2532_v26  ;;  %v2576_v47 = vsel %vm1004_vm1, %v4455_v21, %v2218_v4 }
 0x1af   : > { %3570 = vmatprep.mubr.msk.f32.mxu1 %vm2609_vm5, %v2590_v15  ;;  %v2593_v28 = vsel %vm2583_vm4, %v2576_v47, %v2538_v2 }
 0x1b0   : > { %3571 = vmatmul.mubr.msk.f32.vlgmr.msra.gmra.mxu1 %vm2609_vm5, %v2591_v54  ;;  %v2540_v41 = vpop.permute.xlu0 %2539 }
 0x1b1   : > { %v2542_v9 = vpop.permute.xlu1 %2541 }
 0x1b4   : > { %v2216_v7 = vpop.permute.xlu0 %2215 }
 0x1b5   : > { %v2575_v14 = vsel %vm1004_vm1, %v4480_v16, %v2216_v7  ;;  %v2222_v20 = vpop.permute.xlu1 %2221 }
 0x1b6   : > { %v2592_v5 = vsel %vm2583_vm4, %v2575_v14, %v2536_v46  ;;  %v2578_v44 = vsel %vm1004_vm1, %v4523_v22, %v2222_v20 }
 0x1b7   : > { %3573 = vmatprep.mubr.msk.f32.mxu1 %vm2609_vm5, %v2592_v5  ;;  %v2595_v36 = vsel %vm2583_vm4, %v2578_v44, %v2542_v9 }
 0x1b8   : > { %3574 = vmatmul.mubr.msk.f32.gmra.mxu1 %vm2609_vm5, %v2593_v28  ;;  %v2544_v33 = vpop.permute.xlu0 %2543 }
 0x1b9   : > { %v2546_v13 = vpop.permute.xlu1 %2545 }
 0x1bc   : > { %v2220_v53 = vpop.permute.xlu0 %2219 }
 0x1bd   : > { %v2577_v21 = vsel %vm1004_vm1, %v4544_v56, %v2220_v53  ;;  %v2226_v32 = vpop.permute.xlu1 %2225 }
 0x1be   : > { %v2594_v16 = vsel %vm2583_vm4, %v2577_v21, %v2540_v41  ;;  %v2580_v34 = vsel %vm1004_vm1, %v4564_v60, %v2226_v32 }
 0x1bf   : > { %3576 = vmatprep.mubr.msk.f32.mxu1 %vm2609_vm5, %v2594_v16  ;;  %v2597_v56 = vsel %vm2583_vm4, %v2580_v34, %v2546_v13 }
 0x1c0   : > { %3577 = vmatmul.mubr.msk.f32.gmra.mxu1 %vm2609_vm5, %v2595_v36  ;;  %v2224_v61 = vpop.permute.xlu0 %2223 }
 0x1c1   : > { %v2579_v22 = vsel %vm1004_vm1, %v4567_v35, %v2224_v61  ;;  %v2230_v23 = vpop.permute.xlu1 %2229 }
 0x1c2   : > { %v2596_v8 = vsel %vm2583_vm4, %v2579_v22, %v2544_v33  ;;  %v2582_v24 = vsel %vm1004_vm1, %v4578_v3, %v2230_v23  ;;  %v3112_v3 = vld [vmem:[%s5010_s4 + $0x8] sm:$0xff] }
 0x1c3   : > { %3579 = vmatprep.mubr.msk.f32.mxu1 %vm2609_vm5, %v2596_v8  ;;  %3585 = vmatprep.subr.mxu1 %v3112_v3 }
 0x1c4   : > { %3580 = vmatmul.mubr.msk.f32.gmra.mxu1 %vm2609_vm5, %v2597_v56  ;;  %v2228_v31 = vpop.permute.xlu0 %2227 }
 0x1c5   : > { %v2550_v51 = vpop.permute.xlu1 %2549  ;;  %v2581_v60 = vsel %vm1004_vm1, %v4580_v43, %v2228_v31  ;;  %3586 = vmatpush3.msra.mxu1 %v3112_v3 }
 0x1c6   : > { %v2599_v40 = vsel %vm2583_vm4, %v2582_v24, %v2550_v51  ;;  %3587 = vmatprep.subr.mxu1 %v3111_v17 }
 0x1c7   : > { %3588 = vmatpush3.msra.mxu1 %v3111_v17 }
 0x1c8   : > { %v2548_v49 = vpop.permute.xlu0 %2547 }
 0x1c9   : > { %v2598_v35 = vsel %vm2583_vm4, %v2581_v60, %v2548_v49  ;;  %v2865_v26 = vpop.permute.xlu1 %2864 }
 0x1ca   : > { %3582 = vmatprep.mubr.msk.f32.mxu1 %vm2609_vm5, %v2598_v35  ;;  %v3000_v38 = vsel %vm1004_vm1, %v4603_v48, %v2865_v26 }
 0x1cb   : > { %3583 = vmatmul.mubr.msk.f32.gmra.mxu1 %vm2609_vm5, %v2599_v40 }
 0x1cc   : > { %v2863_v58 = vpop.permute.xlu0 %2862 }
 0x1cd   : > { %v2999_v43 = vsel %vm1004_vm1, %v4609_v62, %v2863_v58  ;;  %v2954_v57 = vpop.permute.xlu1 %2953 }
 0x1ce   : > { %v3016_v1 = vsel %vm2583_vm4, %v3000_v38, %v2954_v57  ;;  %v4894_v57 = vld [vmem:[%s5012_s6] ss:$0 sm:$0xff] }
 0x1cf   : > { %3049 = vrot.lane.b32.xlu1 %v3016_v1, %s3689_s28 }
 0x1d0   : > { %v2952_v63 = vpop.permute.xlu0 %2951 }
 0x1d1   : > { %v3015_v48 = vsel %vm2583_vm4, %v2999_v43, %v2952_v63  ;;  %v2869_v62 = vpop.permute.xlu1 %2868 }
 0x1d2   : > { %3047 = vrot.lane.b32.xlu0 %v3015_v48, %s3689_s28  ;;  %v3002_v37 = vsel %vm1004_vm1, %v4621_v45, %v2869_v62 }
 0x1d4   : > { %v2867_v52 = vpop.permute.xlu0 %2866 }
 0x1d5   : > { %v3001_v46 = vsel %vm1004_vm1, %v4628_v11, %v2867_v52  ;;  %v2958_v2 = vpop.permute.xlu1 %2957 }
 0x1d6   : > { %v3018_v29 = vsel %vm2583_vm4, %v3002_v37, %v2958_v2 }
 0x1d7   : > { %3053 = vrot.lane.b32.xlu1 %v3018_v29, %s3689_s28 }
 0x1d8   : > { %v2956_v42 = vpop.permute.xlu0 %2955 }
 0x1d9   : > { %v3017_v19 = vsel %vm2583_vm4, %v3001_v46, %v2956_v42  ;;  %v2873_v4 = vpop.permute.xlu1 %2872 }
 0x1da   : > { %3051 = vrot.lane.b32.xlu0 %v3017_v19, %s3689_s28  ;;  %v3004_v54 = vsel %vm1004_vm1, %v4640_v30, %v2873_v4 }
 0x1dc   : > { %v2871_v15 = vpop.permute.xlu0 %2870 }
 0x1dd   : > { %v3003_v45 = vsel %vm1004_vm1, %v4647_v25, %v2871_v15  ;;  %v2962_v41 = vpop.permute.xlu1 %2961 }
 0x1de   : > { %v3020_v11 = vsel %vm2583_vm4, %v3004_v54, %v2962_v41 }
 0x1df   : > { %3057 = vrot.lane.b32.xlu1 %v3020_v11, %s3689_s28 }
 0x1e0   : > { %v2960_v9 = vpop.permute.xlu0 %2959 }
 0x1e1   : > { %v3019_v47 = vsel %vm2583_vm4, %v3003_v45, %v2960_v9  ;;  %v2877_v7 = vpop.permute.xlu1 %2876 }
 0x1e2   : > { %3055 = vrot.lane.b32.xlu0 %v3019_v47, %s3689_s28  ;;  %v3006_v20 = vsel %vm1004_vm1, %v4659_v39, %v2877_v7 }
 0x1e4   : > { %v2875_v14 = vpop.permute.xlu0 %2874 }
 0x1e5   : > { %v3005_v30 = vsel %vm1004_vm1, %v4666_v18, %v2875_v14  ;;  %v2966_v5 = vpop.permute.xlu1 %2965 }
 0x1e6   : > { %v3022_v25 = vsel %vm2583_vm4, %v3006_v20, %v2966_v5 }
 0x1e7   : > { %3061 = vrot.lane.b32.xlu1 %v3022_v25, %s3689_s28 }
 0x1e8   : > { %v2964_v28 = vpop.permute.xlu0 %2963 }
 0x1e9   : > { %v3021_v33 = vsel %vm2583_vm4, %v3005_v30, %v2964_v28  ;;  %v2881_v13 = vpop.permute.xlu1 %2880 }
 0x1ea   : > { %3059 = vrot.lane.b32.xlu0 %v3021_v33, %s3689_s28  ;;  %v3008_v53 = vsel %vm1004_vm1, %v4678_v50, %v2881_v13 }
 0x1ec   : > { %v2879_v44 = vpop.permute.xlu0 %2878 }
 0x1ed   : > { %v3007_v39 = vsel %vm1004_vm1, %v4685_v6, %v2879_v44  ;;  %v2970_v21 = vpop.permute.xlu1 %2969 }
 0x1ee   : > { %v3024_v18 = vsel %vm2583_vm4, %v3008_v53, %v2970_v21 }
 0x1ef   : > { %3065 = vrot.lane.b32.xlu1 %v3024_v18, %s3689_s28 }
 0x1f0   : > { %v2968_v32 = vpop.permute.xlu0 %2967 }
 0x1f1   : > { %v3023_v16 = vsel %vm2583_vm4, %v3007_v39, %v2968_v32  ;;  %v2885_v36 = vpop.permute.xlu1 %2884 }
 0x1f2   : > { %3063 = vrot.lane.b32.xlu0 %v3023_v16, %s3689_s28  ;;  %v3010_v61 = vsel %vm1004_vm1, %v4697_v59, %v2885_v36 }
 0x1f4   : > { %v2883_v34 = vpop.permute.xlu0 %2882 }
 0x1f5   : > { %v3009_v50 = vsel %vm1004_vm1, %v4704_v27, %v2883_v34  ;;  %v2974_v22 = vpop.permute.xlu1 %2973 }
 0x1f6   : > { %v3026_v6 = vsel %vm2583_vm4, %v3010_v61, %v2974_v22 }
 0x1f7   : > { %3069 = vrot.lane.b32.xlu1 %v3026_v6, %s3689_s28 }
 0x1f8   : > { %v2972_v23 = vpop.permute.xlu0 %2971 }
 0x1f9   : > { %v3025_v8 = vsel %vm2583_vm4, %v3009_v50, %v2972_v23  ;;  %v2889_v56 = vpop.permute.xlu1 %2888 }
 0x1fa   : > { %3067 = vrot.lane.b32.xlu0 %v3025_v8, %s3689_s28  ;;  %v3012_v51 = vsel %vm1004_vm1, %v4716_v10, %v2889_v56 }
 0x1fc   : > { %v2887_v31 = vpop.permute.xlu0 %2886 }
 0x1fd   : > { %v3011_v59 = vsel %vm1004_vm1, %v4723_v12, %v2887_v31  ;;  %v2978_v60 = vpop.permute.xlu1 %2977 }
 0x1fe   : > { %v3028_v27 = vsel %vm2583_vm4, %v3012_v51, %v2978_v60 }
 0x1ff   : > { %3073 = vrot.lane.b32.xlu1 %v3028_v27, %s3689_s28 }
 0x200   : > { %v2976_v49 = vpop.permute.xlu0 %2975 }
 0x201   : > { %v3027_v24 = vsel %vm2583_vm4, %v3011_v59, %v2976_v49  ;;  %v2893_v35 = vpop.permute.xlu1 %2892 }
 0x202   : > { %3071 = vrot.lane.b32.xlu0 %v3027_v24, %s3689_s28  ;;  %v3014_v26 = vsel %vm1004_vm1, %v4743_v0, %v2893_v35 }
 0x204   : > { %v2891_v40 = vpop.permute.xlu0 %2890 }
 0x205   : > { %v3013_v10 = vsel %vm1004_vm1, %v4750_v55, %v2891_v40  ;;  %v2982_v58 = vpop.permute.xlu1 %2981 }
 0x206   : > { %v3030_v12 = vsel %vm2583_vm4, %v3014_v26, %v2982_v58 }
 0x207   : > { %3077 = vrot.lane.b32.xlu1 %v3030_v12, %s3689_s28 }
 0x208   : > { %v2980_v38 = vpop.permute.xlu0 %2979 }
 0x209   : > { %v3029_v43 = vsel %vm2583_vm4, %v3013_v10, %v2980_v38 }
 0x20a   : > { %3075 = vrot.lane.b32.xlu0 %v3029_v43, %s3689_s28 }
 0x241   : > { %v3050_v48 = vpop.permute.xlu1 %3049 }
 0x244   : > { %v3048_v62 = vpop.permute.xlu0 %3047 }
 0x247   : > { %v3563_v1 = vpop.f32.mrf.mxu0 }
 0x248   : > { %v2733_v0 = vadd.f32 %v3563_v1, %v4894_v57 }
 0x249   : > { %v2727_v3 = vpop.f32.mrf.mxu0  ;;  %v3054_v15 = vpop.permute.xlu1 %3053 }
 0x24a   : > { %v2728_v55 = vadd.f32 %v4894_v57, %v2727_v3  ;;  %v2807_v17 = vmax.f32 %v2733_v0, 0.0 }
 0x24c   : > { %v2806_v63 = vmax.f32 %v2728_v55, 0.0  ;;  %v3096_v37 = vsel %vm1004_vm1, %v2807_v17, %v3050_v48  ;;  %v3052_v54 = vpop.permute.xlu0 %3051 }
 0x24e   : > { %v3095_v52 = vsel %vm1004_vm1, %v2806_v63, %v3048_v62 }
 0x24f   : > { %3589 = vmatprep.mubr.msk.f32.mxu1 %vm3120_vm6, %v3095_v52 }
 0x250   : > { %3590 = vmatmul.mubr.msk.f32.vlgmr.msra.gmra.mxu1 %vm3120_vm6, %v3096_v37 }
 0x251   : > { %v3566_v46 = vpop.f32.mrf.mxu0  ;;  %v3058_v5 = vpop.permute.xlu1 %3057 }
 0x252   : > { %v2743_v2 = vadd.f32 %v3566_v46, %v4894_v57 }
 0x253   : > { %v2737_v29 = vpop.f32.mrf.mxu0 }
 0x254   : > { %v2738_v42 = vadd.f32 %v4894_v57, %v2737_v29  ;;  %v2809_v19 = vmax.f32 %v2743_v2, 0.0  ;;  %v3056_v30 = vpop.permute.xlu0 %3055 }
 0x256   : > { %v2808_v4 = vmax.f32 %v2738_v42, 0.0  ;;  %v3098_v41 = vsel %vm1004_vm1, %v2809_v19, %v3054_v15 }
 0x258   : > { %v3097_v45 = vsel %vm1004_vm1, %v2808_v4, %v3052_v54  ;;  %v4947_v54 = vld [vmem:[%s5013_s7] ss:$0 sm:$0xff] }
 0x259   : > { %3592 = vmatprep.mubr.msk.f32.mxu1 %vm3120_vm6, %v3097_v45  ;;  %v3062_v32 = vpop.permute.xlu1 %3061 }
 0x25a   : > { %3593 = vmatmul.mubr.msk.f32.gmra.mxu1 %vm3120_vm6, %v3098_v41 }
 0x25c   : > { %v3060_v18 = vpop.permute.xlu0 %3059 }
 0x261   : > { %v3066_v56 = vpop.permute.xlu1 %3065 }
 0x263   : > { %v3569_v11 = vpop.f32.mrf.mxu0 }
 0x264   : > { %v2753_v9 = vadd.f32 %v3569_v11, %v4894_v57  ;;  %v3064_v8 = vpop.permute.xlu0 %3063 }
 0x265   : > { %v2747_v47 = vpop.f32.mrf.mxu0 }
 0x266   : > { %v2748_v7 = vadd.f32 %v4894_v57, %v2747_v47  ;;  %v2811_v14 = vmax.f32 %v2753_v9, 0.0 }
 0x268   : > { %v2810_v20 = vmax.f32 %v2748_v7, 0.0  ;;  %v3100_v28 = vsel %vm1004_vm1, %v2811_v14, %v3058_v5 }
 0x269   : > { %v3070_v40 = vpop.permute.xlu1 %3069 }
 0x26a   : > { %v3099_v25 = vsel %vm1004_vm1, %v2810_v20, %v3056_v30 }
 0x26b   : > { %3595 = vmatprep.mubr.msk.f32.mxu1 %vm3120_vm6, %v3099_v25 }
 0x26c   : > { %3596 = vmatmul.mubr.msk.f32.gmra.mxu1 %vm3120_vm6, %v3100_v28  ;;  %v3068_v58 = vpop.permute.xlu0 %3067 }
 0x270   : > { %v3572_v33 = vpop.f32.mrf.mxu1 }
 0x271   : > { %v2763_v13 = vadd.f32 %v3572_v33, %v4894_v57  ;;  %v3074_v55 = vpop.permute.xlu1 %3073 }
 0x272   : > { %v2757_v44 = vpop.f32.mrf.mxu1 }
 0x273   : > { %v2758_v53 = vadd.f32 %v4894_v57, %v2757_v44  ;;  %v2813_v39 = vmax.f32 %v2763_v13, 0.0 }
 0x274   : > { %v3072_v17 = vpop.permute.xlu0 %3071 }
 0x275   : > { %v2812_v21 = vmax.f32 %v2758_v53, 0.0  ;;  %v3102_v34 = vsel %vm1004_vm1, %v2813_v39, %v3062_v32 }
 0x277   : > { %v3101_v16 = vsel %vm1004_vm1, %v2812_v21, %v3060_v18 }
 0x278   : > { %v3575_v36 = vpop.f32.mrf.mxu1  ;;  %3598 = vmatprep.mubr.msk.f32.mxu1 %vm3120_vm6, %v3101_v16 }
 0x279   : > { %v2773_v61 = vadd.f32 %v3575_v36, %v4894_v57  ;;  %3599 = vmatmul.mubr.msk.f32.gmra.mxu1 %vm3120_vm6, %v3102_v34  ;;  %v3078_v42 = vpop.permute.xlu1 %3077 }
 0x27a   : > { %v2767_v50 = vpop.f32.mrf.mxu1 }
 0x27b   : > { %v2768_v22 = vadd.f32 %v4894_v57, %v2767_v50  ;;  %v2815_v6 = vmax.f32 %v2773_v61, 0.0 }
 0x27c   : > { %v3076_v19 = vpop.permute.xlu0 %3075 }
 0x27d   : > { %v2814_v23 = vmax.f32 %v2768_v22, 0.0  ;;  %v3104_v59 = vsel %vm1004_vm1, %v2815_v6, %v3066_v56 }
 0x27f   : > { %v3103_v31 = vsel %vm1004_vm1, %v2814_v23, %v3064_v8 }
 0x280   : > { %v3578_v51 = vpop.f32.mrf.mxu1  ;;  %3601 = vmatprep.mubr.msk.f32.mxu1 %vm3120_vm6, %v3103_v31 }
 0x281   : > { %v2783_v60 = vadd.f32 %v3578_v51, %v4894_v57  ;;  %3602 = vmatmul.mubr.msk.f32.gmra.mxu1 %vm3120_vm6, %v3104_v59 }
 0x282   : > { %v2777_v27 = vpop.f32.mrf.mxu1 }
 0x283   : > { %v2778_v49 = vadd.f32 %v4894_v57, %v2777_v27  ;;  %v2817_v24 = vmax.f32 %v2783_v60, 0.0 }
 0x284   : > { %v3581_v35 = vpop.f32.mrf.mxu1 }
 0x285   : > { %v2816_v26 = vmax.f32 %v2778_v49, 0.0  ;;  %v2793_v10 = vadd.f32 %v3581_v35, %v4894_v57  ;;  %v3106_v0 = vsel %vm1004_vm1, %v2817_v24, %v3070_v40 }
 0x286   : > { %v2787_v12 = vpop.f32.mrf.mxu1 }
 0x287   : > { %v2788_v38 = vadd.f32 %v4894_v57, %v2787_v12  ;;  %v3105_v43 = vsel %vm1004_vm1, %v2816_v26, %v3068_v58  ;;  %v2819_v1 = vmax.f32 %v2793_v10, 0.0 }
 0x288   : > { %3604 = vmatprep.mubr.msk.f32.mxu1 %vm3120_vm6, %v3105_v43 }
 0x289   : > { %v2818_v3 = vmax.f32 %v2788_v38, 0.0  ;;  %3605 = vmatmul.mubr.msk.f32.gmra.mxu1 %vm3120_vm6, %v3106_v0  ;;  %v3108_v62 = vsel %vm1004_vm1, %v2819_v1, %v3074_v55 }
 0x28b   : > { %v3107_v63 = vsel %vm1004_vm1, %v2818_v3, %v3072_v17  ;;  %v3584_v48 = vpop.f32.mrf.mxu1 }
 0x28c   : > { %v2803_v52 = vadd.f32 %v3584_v48, %v4894_v57  ;;  %3607 = vmatprep.mubr.msk.f32.mxu1 %vm3120_vm6, %v3107_v63 }
 0x28d   : > { %v2797_v37 = vpop.f32.mrf.mxu1  ;;  %3608 = vmatmul.mubr.msk.f32.gmra.mxu1 %vm3120_vm6, %v3108_v62 }
 0x28e   : > { %v2798_v46 = vadd.f32 %v4894_v57, %v2797_v37  ;;  %v2821_v2 = vmax.f32 %v2803_v52, 0.0 }
 0x290   : > { %v2820_v29 = vmax.f32 %v2798_v46, 0.0  ;;  %v3110_v15 = vsel %vm1004_vm1, %v2821_v2, %v3078_v42 }
 0x292   : > { %v3109_v4 = vsel %vm1004_vm1, %v2820_v29, %v3076_v19 }
 0x293   : > { %3610 = vmatprep.mubr.msk.f32.mxu1 %vm3120_vm6, %v3109_v4 }
 0x294   : > { %3611 = vmatmul.mubr.msk.f32.gmra.mxu1 %vm3120_vm6, %v3110_v15 }
 0x310   : > { %v3591_v45 = vpop.f32.mrf.mxu1 }
 0x311   : > { %v3241_v57 = vadd.f32 %v3591_v45, %v4947_v54 }
 0x312   : > { %v3235_v41 = vpop.f32.mrf.mxu1 }
 0x313   : > { %v3315_v11 = vmax.f32 %v3241_v57, 0.0  ;;  %v3236_v9 = vadd.f32 %v4947_v54, %v3235_v41 }
 0x315   : > { %3331 = vst.msk [vmem:[%s4954_s19 + $0x8] sm:$0xff] %vm3120_vm6, %v3315_v11  ;;  %v3314_v47 = vmax.f32 %v3236_v9, 0.0 }
 0x317   : > { %3330 = vst.msk [vmem:[%s4954_s19] sm:$0xff] %vm3120_vm6, %v3314_v47 }
 0x31a   : > { %v3594_v7 = vpop.f32.mrf.mxu1 }
 0x31b   : > { %v3251_v14 = vadd.f32 %v3594_v7, %v4947_v54 }
 0x31c   : > { %v3245_v20 = vpop.f32.mrf.mxu1 }
 0x31d   : > { %v3317_v30 = vmax.f32 %v3251_v14, 0.0  ;;  %v3246_v5 = vadd.f32 %v4947_v54, %v3245_v20 }
 0x31f   : > { %3333 = vst.msk [vmem:[%s4954_s19 + $0x18] sm:$0xff] %vm3120_vm6, %v3317_v30  ;;  %v3316_v25 = vmax.f32 %v3246_v5, 0.0 }
 0x321   : > { %3332 = vst.msk [vmem:[%s4954_s19 + $0x10] sm:$0xff] %vm3120_vm6, %v3316_v25 }
 0x32c   : > { %v3597_v28 = vpop.f32.mrf.mxu1 }
 0x32d   : > { %v3261_v33 = vadd.f32 %v3597_v28, %v4947_v54 }
 0x32e   : > { %v3255_v13 = vpop.f32.mrf.mxu1 }
 0x32f   : > { %v3319_v44 = vmax.f32 %v3261_v33, 0.0  ;;  %v3256_v53 = vadd.f32 %v4947_v54, %v3255_v13 }
 0x331   : > { %3335 = vst.msk [vmem:[%s4954_s19 + $0x28] sm:$0xff] %vm3120_vm6, %v3319_v44  ;;  %v3318_v39 = vmax.f32 %v3256_v53, 0.0 }
 0x333   : > { %3334 = vst.msk [vmem:[%s4954_s19 + $0x20] sm:$0xff] %vm3120_vm6, %v3318_v39 }
 0x339   : > { %v3600_v21 = vpop.f32.mrf.mxu1 }
 0x33a   : > { %v3271_v18 = vadd.f32 %v3600_v21, %v4947_v54 }
 0x33b   : > { %v3265_v32 = vpop.f32.mrf.mxu1 }
 0x33c   : > { %v3321_v16 = vmax.f32 %v3271_v18, 0.0  ;;  %v3266_v36 = vadd.f32 %v4947_v54, %v3265_v32 }
 0x33e   : > { %3337 = vst.msk [vmem:[%s4954_s19 + $0x38] sm:$0xff] %vm3120_vm6, %v3321_v16  ;;  %v3320_v34 = vmax.f32 %v3266_v36, 0.0 }
 0x340   : > { %3336 = vst.msk [vmem:[%s4954_s19 + $0x30] sm:$0xff] %vm3120_vm6, %v3320_v34 }
 0x341   : > { %v3603_v61 = vpop.f32.mrf.mxu1 }
 0x342   : > { %v3281_v50 = vadd.f32 %v3603_v61, %v4947_v54 }
 0x343   : > { %v3275_v22 = vpop.f32.mrf.mxu1 }
 0x344   : > { %v3323_v6 = vmax.f32 %v3281_v50, 0.0  ;;  %v3276_v23 = vadd.f32 %v4947_v54, %v3275_v22 }
 0x346   : > { %3339 = vst.msk [vmem:[%s4954_s19 + $0x48] sm:$0xff] %vm3120_vm6, %v3323_v6  ;;  %v3322_v8 = vmax.f32 %v3276_v23, 0.0 }
 0x348   : > { %3338 = vst.msk [vmem:[%s4954_s19 + $0x40] sm:$0xff] %vm3120_vm6, %v3322_v8 }
 0x349   : > { %v3606_v56 = vpop.f32.mrf.mxu1 }
 0x34a   : > { %v3291_v31 = vadd.f32 %v3606_v56, %v4947_v54 }
 0x34b   : > { %v3285_v51 = vpop.f32.mrf.mxu1 }
 0x34c   : > { %v3325_v59 = vmax.f32 %v3291_v31, 0.0  ;;  %v3286_v60 = vadd.f32 %v4947_v54, %v3285_v51 }
 0x34d   : > { %v3609_v27 = vpop.f32.mrf.mxu1 }
 0x34e   : > { %3341 = vst.msk [vmem:[%s4954_s19 + $0x58] sm:$0xff] %vm3120_vm6, %v3325_v59  ;;  %v3324_v49 = vmax.f32 %v3286_v60, 0.0  ;;  %v3301_v24 = vadd.f32 %v3609_v27, %v4947_v54 }
 0x34f   : > { %v3295_v35 = vpop.f32.mrf.mxu1 }
 0x350   : > { %3340 = vst.msk [vmem:[%s4954_s19 + $0x50] sm:$0xff] %vm3120_vm6, %v3324_v49  ;;  %v3327_v40 = vmax.f32 %v3301_v24, 0.0  ;;  %v3296_v26 = vadd.f32 %v4947_v54, %v3295_v35 }
 0x352   : > { %3343 = vst.msk [vmem:[%s4954_s19 + $0x68] sm:$0xff] %vm3120_vm6, %v3327_v40  ;;  %v3326_v10 = vmax.f32 %v3296_v26, 0.0 }
 0x354   : > { %3342 = vst.msk [vmem:[%s4954_s19 + $0x60] sm:$0xff] %vm3120_vm6, %v3326_v10  ;;  %v3612_v58 = vpop.f32.mrf.mxu1 }
 0x355   : > { %v3311_v12 = vadd.f32 %v3612_v58, %v4947_v54 }
 0x356   : > { %v3305_v38 = vpop.f32.mrf.mxu1 }
 0x357   : > { %v3329_v43 = vmax.f32 %v3311_v12, 0.0  ;;  %v3306_v1 = vadd.f32 %v4947_v54, %v3305_v38 }
 0x359   : > { %3345 = vst.msk [vmem:[%s4954_s19 + $0x78] sm:$0xff] %vm3120_vm6, %v3329_v43  ;;  %v3328_v0 = vmax.f32 %v3306_v1, 0.0 }
 0x35b   : > { %3344 = vst.msk [vmem:[%s4954_s19 + $0x70] sm:$0xff] %vm3120_vm6, %v3328_v0 }
 0x35c PF: > { %s18_s27 = sadd.s32 1, %s3685_s27  }
 0x35d   : > { %p15_p4 = scmp.ge.s32.totalorder %s18_s27, 6  }
 0x35f   :  { %17 = sbr.rel (!%p15_p4) target bundleno = 1 (0x1), region = 82 }

</bundles_post_ra>
